<compile_context>
chip_gen: v7x
topology: tpu7x:2x2x1
jax: 0.10.0
libtpu: 0.0.40
codegen_flags: <defaults>
</compile_context>

<pallas_src>
import functools

import jax
import jax.numpy as jnp
from jax import lax
from jax.experimental import pallas as pl
from jax.experimental.pallas import tpu as pltpu


def _round_up(n, m):
    return ((n + m - 1) // m) * m


def _lstm_chunk_kernel(x_ref, w_ih_ref, w_hh_ref, b_ref,
                       h_out_ref, gx_scr, h_scr, c_scr, *, unroll):
    """One grid step == one chunk of Tc timesteps.

    x_ref:      (Tc, B_pad, D_i)     time-major input chunk
    w_ih_ref:   (D_i, 4*D_hp)        input weight, gate order [i,f,o,g], padded
    w_hh_ref:   (D_hp, 4*D_hp)       recurrent weight (padded rows are zero)
    b_ref:      (1, 4*D_hp)          b_ih + b_hh (padded lanes zero)
    h_out_ref:  (Tc, B_pad, D_hp)    hidden state per timestep (lane-dense)
    gx_scr:     (Tc, B_pad, 4*D_hp)  chunk-local input projection (VMEM only)
    h_scr/c_scr:(B_pad, D_hp)        cross-chunk recurrent state
    """
    tc, b_pad, d_i = x_ref.shape
    d_hp = h_scr.shape[-1]

    @pl.when(pl.program_id(0) == 0)
    def _():
        h_scr[...] = jnp.zeros_like(h_scr)
        c_scr[...] = jnp.zeros_like(c_scr)

    # Chunk-entry input projection: one MXU matmul covering all Tc timesteps,
    # bias folded in.  Lives only in VMEM scratch (never round-trips HBM).
    gx2d = jnp.dot(x_ref[...].reshape(tc * b_pad, d_i), w_ih_ref[...],
                   preferred_element_type=jnp.float32) + b_ref[...]
    gx_scr[...] = gx2d.reshape(tc, b_pad, 4 * d_hp)

    # Serial recurrence.  h/c ride in vregs along the dependence chain; the
    # scratch refs are only touched at chunk entry/exit.
    def step(tt, carry):
        h, c = carry
        gates = gx_scr[tt] + jnp.dot(h, w_hh_ref[...],
                                     preferred_element_type=jnp.float32)
        # Gate layout [i, f, o, g]: one wide sigmoid + one tanh; every slice is
        # a whole number of 128-lane vregs.
        ifo = jax.nn.sigmoid(gates[:, :3 * d_hp])
        g_g = jnp.tanh(gates[:, 3 * d_hp:])
        i_g = ifo[:, :d_hp]
        f_g = ifo[:, d_hp:2 * d_hp]
        o_g = ifo[:, 2 * d_hp:]
        c_new = f_g * c + i_g * g_g
        h_new = o_g * jnp.tanh(c_new)
        h_out_ref[tt] = h_new
        return (h_new, c_new)

    h_fin, c_fin = lax.fori_loop(0, tc, step, (h_scr[...], c_scr[...]),
                                 unroll=unroll)
    # NOTE: after the last chunk this carry has been advanced through padded
    # tail timesteps (x = 0); only the per-timestep h_out is consumed below.
    h_scr[...] = h_fin
    c_scr[...] = c_fin


def _plan_chunk(T, B_pad, D_i, D_hp, budget_bytes=24 * 1024 * 1024):
    """Largest time-chunk Tc whose VMEM working set fits the budget
    (budget chosen to be safe against v7x's 64 MiB physical VMEM)."""
    def need(tc):
        x_chunk = 2 * tc * B_pad * D_i * 4            # double-buffered input chunk
        out_chunk = 2 * tc * B_pad * D_hp * 4         # double-buffered output chunk
        gx = tc * B_pad * 4 * D_hp * 4                # chunk-local scratch
        weights = (D_i + D_hp + 1) * 4 * D_hp * 4     # single-buffered residents
        state = 2 * B_pad * D_hp * 4                  # h/c carry
        return x_chunk + out_chunk + gx + weights + state

    cands = sorted({t for t in (1, 2, 4, 8, 16, 32, 64, 128) if t <= T} | {T},
                   reverse=True)
    Tc = 1
    for t in cands:
        if need(t) <= budget_bytes:
            Tc = t
            break
    return Tc, _round_up(T, Tc)


@jax.jit
def lstm_multitask_forward(x, kparams):
    """x: (B, T, D_i) batch-first.  Returns (y_persona, y_sentiment)."""
    B, T, D_i = x.shape
    D_hp = kparams["w_hh_t"].shape[0]

    B_pad = max(8, _round_up(B, 8))                   # fill f32 sublanes
    Tc, T_pad = _plan_chunk(T, B_pad, D_i, D_hp)

    # Unroll depth gated on the per-step live working set (gates slab) so deep
    # unrolls don't flip large-D_h configs into a spill-bound regime.
    gate_bytes = B_pad * 4 * D_hp * 4
    if gate_bytes <= 64 * 1024:
        unroll = min(Tc, 16)
    elif gate_bytes <= 256 * 1024:
        unroll = min(Tc, 4)
    else:
        unroll = 1

    # Only the small (D_i-wide) x tensor is transposed/padded in XLA; the
    # 4*D_hp-wide gate slab never touches HBM.
    x_tm = jnp.transpose(x.astype(jnp.float32), (1, 0, 2))       # (T, B, D_i)
    x_tm = jnp.pad(x_tm, ((0, T_pad - T), (0, B_pad - B), (0, 0)))

    kernel = functools.partial(_lstm_chunk_kernel, unroll=unroll)
    h_tm = pl.pallas_call(
        kernel,
        out_shape=jax.ShapeDtypeStruct((T_pad, B_pad, D_hp), jnp.float32),
        grid=(T_pad // Tc,),
        in_specs=[
            pl.BlockSpec((Tc, B_pad, D_i), lambda i: (i, 0, 0)),
            pl.BlockSpec((D_i, 4 * D_hp), lambda i: (0, 0),
                         pipeline_mode=pl.Buffered(1)),   # resident, single-buffer
            pl.BlockSpec((D_hp, 4 * D_hp), lambda i: (0, 0),
                         pipeline_mode=pl.Buffered(1)),
            pl.BlockSpec((1, 4 * D_hp), lambda i: (0, 0),
                         pipeline_mode=pl.Buffered(1)),
        ],
        out_specs=pl.BlockSpec((Tc, B_pad, D_hp), lambda i: (i, 0, 0)),
        scratch_shapes=[
            pltpu.VMEM((Tc, B_pad, 4 * D_hp), jnp.float32),  # gx chunk
            pltpu.VMEM((B_pad, D_hp), jnp.float32),          # h carry
            pltpu.VMEM((B_pad, D_hp), jnp.float32),          # c carry
        ],
        compiler_params=pltpu.CompilerParams(
            dimension_semantics=("arbitrary",),               # serial recurrence
            vmem_limit_bytes=32 * 1024 * 1024),
    )(x_tm, kparams["w_ih_t"], kparams["w_hh_t"], kparams["b_gates"])

    # Tiny output heads in XLA, applied time-major (no transpose of the full
    # hidden slab).  Padded D_hp lanes are exactly zero and the padded head
    # rows are zero, so no feature-dim slicing is needed.
    h_valid = h_tm[:T, :B, :]                                        # (T, B, D_hp)
    y_sentiment = (jnp.einsum("tbd,ds->bts", h_valid, kparams["w_s_t"])
                   + kparams["b_s"])                                 # (B, T, 3)
    y_persona = jax.nn.sigmoid(h_tm[T - 1, :B, :] @ kparams["w_p_t"]
                               + kparams["b_p"])                     # (B, 5)
    return y_persona, y_sentiment


def init_torch_params(key, D_i, D_h):
    """PyTorch-layout parameters (gate order [i, f, g, o]), uniform(+-1/sqrt(D_h))."""
    ks = jax.random.split(key, 8)
    bound = 1.0 / float(D_h) ** 0.5
    u = lambda k, shape: jax.random.uniform(k, shape, jnp.float32, -bound, bound)
    return {
        "w_ih": u(ks[0], (4 * D_h, D_i)),   # lstm.weight_ih_l0
        "w_hh": u(ks[1], (4 * D_h, D_h)),   # lstm.weight_hh_l0
        "b_ih": u(ks[2], (4 * D_h,)),
        "b_hh": u(ks[3], (4 * D_h,)),
        "w_s": u(ks[4], (3, D_h)),          # slinear.weight
        "b_s": u(ks[5], (3,)),
        "w_p": u(ks[6], (5, D_h)),          # plinear.weight
        "b_p": u(ks[7], (5,)),
    }


def pack_params(p, D_h):
    """Repack PyTorch-layout params for the kernel: gate order [i,f,g,o] ->
    [i,f,o,g], hidden dim zero-padded to a multiple of 128 (lane width)."""
    D_hp = _round_up(D_h, 128)

    def reorder_pad(w):
        """(4*D_h, ...) -> (4*D_hp, ...), gate reorder + per-gate zero pad."""
        w4 = w.reshape((4, D_h) + w.shape[1:])
        w4 = w4[jnp.array([0, 1, 3, 2])]             # i, f, g, o -> i, f, o, g
        pad = [(0, 0)] * w4.ndim
        pad[1] = (0, D_hp - D_h)
        return jnp.pad(w4, pad).reshape((4 * D_hp,) + w.shape[1:])

    pad_rows = lambda m: jnp.pad(m, ((0, D_hp - D_h), (0, 0)))
    return {
        "w_ih_t": reorder_pad(p["w_ih"]).T,                         # (D_i, 4*D_hp)
        "w_hh_t": pad_rows(reorder_pad(p["w_hh"]).T),               # (D_hp, 4*D_hp)
        "b_gates": reorder_pad(p["b_ih"] + p["b_hh"]).reshape(1, 4 * D_hp),
        "w_s_t": pad_rows(p["w_s"].T),                              # (D_hp, 3)
        "b_s": p["b_s"],
        "w_p_t": pad_rows(p["w_p"].T),                              # (D_hp, 5)
        "b_p": p["b_p"],
    }


def reference_forward(x, p):
    """Pure-JAX reference of the PyTorch forward (prediction=False)."""
    D_h = p["w_hh"].shape[1]
    w_ih_t, w_hh_t = p["w_ih"].T, p["w_hh"].T
    b = p["b_ih"] + p["b_hh"]

    def step(carry, x_t):
        h, c = carry
        gates = x_t @ w_ih_t + h @ w_hh_t + b
        i_g = jax.nn.sigmoid(gates[:, 0 * D_h:1 * D_h])
        f_g = jax.nn.sigmoid(gates[:, 1 * D_h:2 * D_h])
        g_g = jnp.tanh(gates[:, 2 * D_h:3 * D_h])
        o_g = jax.nn.sigmoid(gates[:, 3 * D_h:4 * D_h])
        c_new = f_g * c + i_g * g_g
        h_new = o_g * jnp.tanh(c_new)
        return (h_new, c_new), h_new

    B = x.shape[0]
    h0 = jnp.zeros((B, D_h), jnp.float32)
    c0 = jnp.zeros((B, D_h), jnp.float32)
    (_, _), hs = lax.scan(step, (h0, c0), jnp.transpose(x, (1, 0, 2)))
    out = jnp.transpose(hs, (1, 0, 2))                              # (B, T, D_h)
    y_sent = out @ p["w_s"].T + p["b_s"]                            # (B, T, 3)
    y_pers = jax.nn.sigmoid(out[:, -1, :] @ p["w_p"].T + p["b_p"])  # (B, 5)
    return y_pers, y_sent


if __name__ == "__main__":
    B, T, D_i, D_h = 2, 8, 16, 32

    key = jax.random.PRNGKey(0)
    k_param, k_x = jax.random.split(key)
    tparams = init_torch_params(k_param, D_i, D_h)
    kparams = pack_params(tparams, D_h)
    x = jax.random.normal(k_x, (B, T, D_i), jnp.float32)

    y_pers, y_sent = lstm_multitask_forward(x, kparams)
    y_pers, y_sent = jax.block_until_ready((y_pers, y_sent))

    y_pers_ref, y_sent_ref = reference_forward(x, tparams)
    assert y_pers.shape == (B, 5) and y_sent.shape == (B, T, 3)
    assert jnp.allclose(y_pers, y_pers_ref, rtol=1e-5, atol=1e-5)
    assert jnp.allclose(y_sent, y_sent_ref, rtol=1e-5, atol=1e-5)

    print("KERNEL_OK")
</pallas_src>

<mosaic_0001>
module attributes {stable_mosaic.version = 11 : i64} {
  func.func @_lstm_chunk_kernel(%arg0: i32, %arg1: memref<8x8x16xf32, #tpu.memory_space<vmem>>, %arg2: memref<16x512xf32, #tpu.memory_space<vmem>>, %arg3: memref<128x512xf32, #tpu.memory_space<vmem>>, %arg4: memref<1x512xf32, #tpu.memory_space<vmem>>, %arg5: memref<8x8x128xf32, #tpu.memory_space<vmem>>, %arg6: memref<8x8x512xf32, #tpu.memory_space<vmem>>, %arg7: memref<8x128xf32, #tpu.memory_space<vmem>>, %arg8: memref<8x128xf32, #tpu.memory_space<vmem>>) attributes {dimension_semantics = [#tpu.dimension_semantics<arbitrary>], iteration_bounds = array<i64: 1>, scalar_prefetch = 0 : i64, scratch_operands = 3 : i64, tpu.core_type = #tpu.core_type<tc>, window_params = [{transform_indices = @transform_0, window_bounds = array<i64: 8, 8, 16>}, {pipeline_mode = #tpu.pipeline_mode<synchronous>, transform_indices = @transform_1, window_bounds = array<i64: 16, 512>}, {pipeline_mode = #tpu.pipeline_mode<synchronous>, transform_indices = @transform_2, window_bounds = array<i64: 128, 512>}, {pipeline_mode = #tpu.pipeline_mode<synchronous>, transform_indices = @transform_3, window_bounds = array<i64: 1, 512>}, {transform_indices = @transform_4, window_bounds = array<i64: 8, 8, 128>}]} {
    %c0_i32 = arith.constant 0 : i32
    %0 = arith.cmpi eq, %arg0, %c0_i32 : i32
    %1 = arith.extui %0 : i1 to i32
    %c0_i32_0 = arith.constant 0 : i32
    %2 = arith.cmpi ne, %1, %c0_i32_0 : i32
    scf.if %2 {
      %cst_83 = arith.constant 0.000000e+00 : f32
      %224 = vector.broadcast %cst_83 : f32 to vector<8x128xf32>
      %c0_84 = arith.constant 0 : index
      %c0_85 = arith.constant 0 : index
      %225 = vector.load %arg7[%c0_84, %c0_85] : memref<8x128xf32, #tpu.memory_space<vmem>>, vector<8x128xf32>
      tpu.vector_store %arg7[%c0_84, %c0_85], %224 {strides = array<i32>} : memref<8x128xf32, #tpu.memory_space<vmem>>, vector<8x128xf32>,
      %cst_86 = arith.constant 0.000000e+00 : f32
      %226 = vector.broadcast %cst_86 : f32 to vector<8x128xf32>
      %c0_87 = arith.constant 0 : index
      %c0_88 = arith.constant 0 : index
      %227 = vector.load %arg8[%c0_87, %c0_88] : memref<8x128xf32, #tpu.memory_space<vmem>>, vector<8x128xf32>
      tpu.vector_store %arg8[%c0_87, %c0_88], %226 {strides = array<i32>} : memref<8x128xf32, #tpu.memory_space<vmem>>, vector<8x128xf32>,
    } else {
    }
    %c0 = arith.constant 0 : index
    %c0_1 = arith.constant 0 : index
    %c0_2 = arith.constant 0 : index
    %3 = vector.load %arg1[%c0, %c0_1, %c0_2] : memref<8x8x16xf32, #tpu.memory_space<vmem>>, vector<8x8x16xf32>
    %4 = vector.shape_cast %3 : vector<8x8x16xf32> to vector<64x16xf32>
    %c0_3 = arith.constant 0 : index
    %c0_4 = arith.constant 0 : index
    %5 = vector.load %arg2[%c0_3, %c0_4] : memref<16x512xf32, #tpu.memory_space<vmem>>, vector<16x512xf32>
    %cst = arith.constant dense<0.000000e+00> : vector<64x512xf32>
    %6 = tpu.matmul %4, %5, %cst {dimension_numbers = #tpu.dot_dimension_numbers<[1], [0], [0], [1], [0, 0, 1, 1], [], []>} : vector<64x16xf32>, vector<16x512xf32>, vector<64x512xf32> -> vector<64x512xf32>
    %c0_5 = arith.constant 0 : index
    %c0_6 = arith.constant 0 : index
    %7 = vector.load %arg4[%c0_5, %c0_6] : memref<1x512xf32, #tpu.memory_space<vmem>>, vector<1x512xf32>
    %8 = vector.broadcast %7 : vector<1x512xf32> to vector<64x512xf32>
    %9 = arith.addf %6, %8 : vector<64x512xf32>
    %10 = vector.shape_cast %9 : vector<64x512xf32> to vector<8x8x512xf32>
    %c0_7 = arith.constant 0 : index
    %c0_8 = arith.constant 0 : index
    %c0_9 = arith.constant 0 : index
    %11 = vector.load %arg6[%c0_7, %c0_8, %c0_9] : memref<8x8x512xf32, #tpu.memory_space<vmem>>, vector<8x8x512xf32>
    tpu.vector_store %arg6[%c0_7, %c0_8, %c0_9], %10 {strides = array<i32>} : memref<8x8x512xf32, #tpu.memory_space<vmem>>, vector<8x8x512xf32>,
    %c0_10 = arith.constant 0 : index
    %c0_11 = arith.constant 0 : index
    %12 = vector.load %arg7[%c0_10, %c0_11] : memref<8x128xf32, #tpu.memory_space<vmem>>, vector<8x128xf32>
    %c0_12 = arith.constant 0 : index
    %c0_13 = arith.constant 0 : index
    %13 = vector.load %arg8[%c0_12, %c0_13] : memref<8x128xf32, #tpu.memory_space<vmem>>, vector<8x128xf32>
    %c0_i32_14 = arith.constant 0 : i32
    %14 = arith.index_cast %c0_i32_14 : i32 to index
    %c0_15 = arith.constant 0 : index
    %c0_16 = arith.constant 0 : index
    %15 = vector.load %arg6[%14, %c0_15, %c0_16] : memref<8x8x512xf32, #tpu.memory_space<vmem>>, vector<1x8x512xf32>
    %16 = vector.shape_cast %15 : vector<1x8x512xf32> to vector<8x512xf32>
    %c0_17 = arith.constant 0 : index
    %c0_18 = arith.constant 0 : index
    %17 = vector.load %arg3[%c0_17, %c0_18] : memref<128x512xf32, #tpu.memory_space<vmem>>, vector<128x512xf32>
    %cst_19 = arith.constant dense<0.000000e+00> : vector<8x512xf32>
    %18 = tpu.matmul %12, %17, %cst_19 {dimension_numbers = #tpu.dot_dimension_numbers<[1], [0], [0], [1], [0, 0, 1, 1], [], []>} : vector<8x128xf32>, vector<128x512xf32>, vector<8x512xf32> -> vector<8x512xf32>
    %19 = arith.addf %16, %18 : vector<8x512xf32>
    %20 = vector.extract_strided_slice %19 {offsets = [0, 0], sizes = [8, 384], strides = [1, 1]} : vector<8x512xf32> to vector<8x384xf32>
    %21 = arith.negf %20 : vector<8x384xf32>
    %22 = math.exp %21 : vector<8x384xf32>
    %cst_20 = arith.constant 1.000000e+00 : f32
    %23 = vector.broadcast %cst_20 : f32 to vector<8x384xf32>
    %24 = arith.addf %23, %22 : vector<8x384xf32>
    %25 = arith.divf %23, %24 : vector<8x384xf32>
    %26 = vector.extract_strided_slice %19 {offsets = [0, 384], sizes = [8, 128], strides = [1, 1]} : vector<8x512xf32> to vector<8x128xf32>
    %27 = math.tanh %26 : vector<8x128xf32>
    %28 = vector.extract_strided_slice %25 {offsets = [0, 0], sizes = [8, 128], strides = [1, 1]} : vector<8x384xf32> to vector<8x128xf32>
    %29 = vector.extract_strided_slice %25 {offsets = [0, 128], sizes = [8, 128], strides = [1, 1]} : vector<8x384xf32> to vector<8x128xf32>
    %30 = vector.extract_strided_slice %25 {offsets = [0, 256], sizes = [8, 128], strides = [1, 1]} : vector<8x384xf32> to vector<8x128xf32>
    %31 = arith.mulf %29, %13 : vector<8x128xf32>
    %32 = arith.mulf %28, %27 : vector<8x128xf32>
    %33 = arith.addf %31, %32 : vector<8x128xf32>
    %34 = math.tanh %33 : vector<8x128xf32>
    %35 = arith.mulf %30, %34 : vector<8x128xf32>
    %36 = arith.index_cast %c0_i32_14 : i32 to index
    %c0_21 = arith.constant 0 : index
    %c0_22 = arith.constant 0 : index
    %37 = vector.load %arg5[%36, %c0_21, %c0_22] : memref<8x8x128xf32, #tpu.memory_space<vmem>>, vector<1x8x128xf32>
    %38 = vector.shape_cast %37 : vector<1x8x128xf32> to vector<8x128xf32>
    %39 = vector.shape_cast %35 : vector<8x128xf32> to vector<1x8x128xf32>
    tpu.vector_store %arg5[%36, %c0_21, %c0_22], %39 {strides = array<i32>} : memref<8x8x128xf32, #tpu.memory_space<vmem>>, vector<1x8x128xf32>,
    %c1_i32 = arith.constant 1 : i32
    %40 = arith.index_cast %c1_i32 : i32 to index
    %c0_23 = arith.constant 0 : index
    %c0_24 = arith.constant 0 : index
    %41 = vector.load %arg6[%40, %c0_23, %c0_24] : memref<8x8x512xf32, #tpu.memory_space<vmem>>, vector<1x8x512xf32>
    %42 = vector.shape_cast %41 : vector<1x8x512xf32> to vector<8x512xf32>
    %c0_25 = arith.constant 0 : index
    %c0_26 = arith.constant 0 : index
    %43 = vector.load %arg3[%c0_25, %c0_26] : memref<128x512xf32, #tpu.memory_space<vmem>>, vector<128x512xf32>
    %cst_27 = arith.constant dense<0.000000e+00> : vector<8x512xf32>
    %44 = tpu.matmul %35, %43, %cst_27 {dimension_numbers = #tpu.dot_dimension_numbers<[1], [0], [0], [1], [0, 0, 1, 1], [], []>} : vector<8x128xf32>, vector<128x512xf32>, vector<8x512xf32> -> vector<8x512xf32>
    %45 = arith.addf %42, %44 : vector<8x512xf32>
    %46 = vector.extract_strided_slice %45 {offsets = [0, 0], sizes = [8, 384], strides = [1, 1]} : vector<8x512xf32> to vector<8x384xf32>
    %47 = arith.negf %46 : vector<8x384xf32>
    %48 = math.exp %47 : vector<8x384xf32>
    %cst_28 = arith.constant 1.000000e+00 : f32
    %49 = vector.broadcast %cst_28 : f32 to vector<8x384xf32>
    %50 = arith.addf %49, %48 : vector<8x384xf32>
    %51 = arith.divf %49, %50 : vector<8x384xf32>
    %52 = vector.extract_strided_slice %45 {offsets = [0, 384], sizes = [8, 128], strides = [1, 1]} : vector<8x512xf32> to vector<8x128xf32>
    %53 = math.tanh %52 : vector<8x128xf32>
    %54 = vector.extract_strided_slice %51 {offsets = [0, 0], sizes = [8, 128], strides = [1, 1]} : vector<8x384xf32> to vector<8x128xf32>
    %55 = vector.extract_strided_slice %51 {offsets = [0, 128], sizes = [8, 128], strides = [1, 1]} : vector<8x384xf32> to vector<8x128xf32>
    %56 = vector.extract_strided_slice %51 {offsets = [0, 256], sizes = [8, 128], strides = [1, 1]} : vector<8x384xf32> to vector<8x128xf32>
    %57 = arith.mulf %55, %33 : vector<8x128xf32>
    %58 = arith.mulf %54, %53 : vector<8x128xf32>
    %59 = arith.addf %57, %58 : vector<8x128xf32>
    %60 = math.tanh %59 : vector<8x128xf32>
    %61 = arith.mulf %56, %60 : vector<8x128xf32>
    %62 = arith.index_cast %c1_i32 : i32 to index
    %c0_29 = arith.constant 0 : index
    %c0_30 = arith.constant 0 : index
    %63 = vector.load %arg5[%62, %c0_29, %c0_30] : memref<8x8x128xf32, #tpu.memory_space<vmem>>, vector<1x8x128xf32>
    %64 = vector.shape_cast %63 : vector<1x8x128xf32> to vector<8x128xf32>
    %65 = vector.shape_cast %61 : vector<8x128xf32> to vector<1x8x128xf32>
    tpu.vector_store %arg5[%62, %c0_29, %c0_30], %65 {strides = array<i32>} : memref<8x8x128xf32, #tpu.memory_space<vmem>>, vector<1x8x128xf32>,
    %c2_i32 = arith.constant 2 : i32
    %66 = arith.index_cast %c2_i32 : i32 to index
    %c0_31 = arith.constant 0 : index
    %c0_32 = arith.constant 0 : index
    %67 = vector.load %arg6[%66, %c0_31, %c0_32] : memref<8x8x512xf32, #tpu.memory_space<vmem>>, vector<1x8x512xf32>
    %68 = vector.shape_cast %67 : vector<1x8x512xf32> to vector<8x512xf32>
    %c0_33 = arith.constant 0 : index
    %c0_34 = arith.constant 0 : index
    %69 = vector.load %arg3[%c0_33, %c0_34] : memref<128x512xf32, #tpu.memory_space<vmem>>, vector<128x512xf32>
    %cst_35 = arith.constant dense<0.000000e+00> : vector<8x512xf32>
    %70 = tpu.matmul %61, %69, %cst_35 {dimension_numbers = #tpu.dot_dimension_numbers<[1], [0], [0], [1], [0, 0, 1, 1], [], []>} : vector<8x128xf32>, vector<128x512xf32>, vector<8x512xf32> -> vector<8x512xf32>
    %71 = arith.addf %68, %70 : vector<8x512xf32>
    %72 = vector.extract_strided_slice %71 {offsets = [0, 0], sizes = [8, 384], strides = [1, 1]} : vector<8x512xf32> to vector<8x384xf32>
    %73 = arith.negf %72 : vector<8x384xf32>
    %74 = math.exp %73 : vector<8x384xf32>
    %cst_36 = arith.constant 1.000000e+00 : f32
    %75 = vector.broadcast %cst_36 : f32 to vector<8x384xf32>
    %76 = arith.addf %75, %74 : vector<8x384xf32>
    %77 = arith.divf %75, %76 : vector<8x384xf32>
    %78 = vector.extract_strided_slice %71 {offsets = [0, 384], sizes = [8, 128], strides = [1, 1]} : vector<8x512xf32> to vector<8x128xf32>
    %79 = math.tanh %78 : vector<8x128xf32>
    %80 = vector.extract_strided_slice %77 {offsets = [0, 0], sizes = [8, 128], strides = [1, 1]} : vector<8x384xf32> to vector<8x128xf32>
    %81 = vector.extract_strided_slice %77 {offsets = [0, 128], sizes = [8, 128], strides = [1, 1]} : vector<8x384xf32> to vector<8x128xf32>
    %82 = vector.extract_strided_slice %77 {offsets = [0, 256], sizes = [8, 128], strides = [1, 1]} : vector<8x384xf32> to vector<8x128xf32>
    %83 = arith.mulf %81, %59 : vector<8x128xf32>
    %84 = arith.mulf %80, %79 : vector<8x128xf32>
    %85 = arith.addf %83, %84 : vector<8x128xf32>
    %86 = math.tanh %85 : vector<8x128xf32>
    %87 = arith.mulf %82, %86 : vector<8x128xf32>
    %88 = arith.index_cast %c2_i32 : i32 to index
    %c0_37 = arith.constant 0 : index
    %c0_38 = arith.constant 0 : index
    %89 = vector.load %arg5[%88, %c0_37, %c0_38] : memref<8x8x128xf32, #tpu.memory_space<vmem>>, vector<1x8x128xf32>
    %90 = vector.shape_cast %89 : vector<1x8x128xf32> to vector<8x128xf32>
    %91 = vector.shape_cast %87 : vector<8x128xf32> to vector<1x8x128xf32>
    tpu.vector_store %arg5[%88, %c0_37, %c0_38], %91 {strides = array<i32>} : memref<8x8x128xf32, #tpu.memory_space<vmem>>, vector<1x8x128xf32>,
    %c3_i32 = arith.constant 3 : i32
    %92 = arith.index_cast %c3_i32 : i32 to index
    %c0_39 = arith.constant 0 : index
    %c0_40 = arith.constant 0 : index
    %93 = vector.load %arg6[%92, %c0_39, %c0_40] : memref<8x8x512xf32, #tpu.memory_space<vmem>>, vector<1x8x512xf32>
    %94 = vector.shape_cast %93 : vector<1x8x512xf32> to vector<8x512xf32>
    %c0_41 = arith.constant 0 : index
    %c0_42 = arith.constant 0 : index
    %95 = vector.load %arg3[%c0_41, %c0_42] : memref<128x512xf32, #tpu.memory_space<vmem>>, vector<128x512xf32>
    %cst_43 = arith.constant dense<0.000000e+00> : vector<8x512xf32>
    %96 = tpu.matmul %87, %95, %cst_43 {dimension_numbers = #tpu.dot_dimension_numbers<[1], [0], [0], [1], [0, 0, 1, 1], [], []>} : vector<8x128xf32>, vector<128x512xf32>, vector<8x512xf32> -> vector<8x512xf32>
    %97 = arith.addf %94, %96 : vector<8x512xf32>
    %98 = vector.extract_strided_slice %97 {offsets = [0, 0], sizes = [8, 384], strides = [1, 1]} : vector<8x512xf32> to vector<8x384xf32>
    %99 = arith.negf %98 : vector<8x384xf32>
    %100 = math.exp %99 : vector<8x384xf32>
    %cst_44 = arith.constant 1.000000e+00 : f32
    %101 = vector.broadcast %cst_44 : f32 to vector<8x384xf32>
    %102 = arith.addf %101, %100 : vector<8x384xf32>
    %103 = arith.divf %101, %102 : vector<8x384xf32>
    %104 = vector.extract_strided_slice %97 {offsets = [0, 384], sizes = [8, 128], strides = [1, 1]} : vector<8x512xf32> to vector<8x128xf32>
    %105 = math.tanh %104 : vector<8x128xf32>
    %106 = vector.extract_strided_slice %103 {offsets = [0, 0], sizes = [8, 128], strides = [1, 1]} : vector<8x384xf32> to vector<8x128xf32>
    %107 = vector.extract_strided_slice %103 {offsets = [0, 128], sizes = [8, 128], strides = [1, 1]} : vector<8x384xf32> to vector<8x128xf32>
    %108 = vector.extract_strided_slice %103 {offsets = [0, 256], sizes = [8, 128], strides = [1, 1]} : vector<8x384xf32> to vector<8x128xf32>
    %109 = arith.mulf %107, %85 : vector<8x128xf32>
    %110 = arith.mulf %106, %105 : vector<8x128xf32>
    %111 = arith.addf %109, %110 : vector<8x128xf32>
    %112 = math.tanh %111 : vector<8x128xf32>
    %113 = arith.mulf %108, %112 : vector<8x128xf32>
    %114 = arith.index_cast %c3_i32 : i32 to index
    %c0_45 = arith.constant 0 : index
    %c0_46 = arith.constant 0 : index
    %115 = vector.load %arg5[%114, %c0_45, %c0_46] : memref<8x8x128xf32, #tpu.memory_space<vmem>>, vector<1x8x128xf32>
    %116 = vector.shape_cast %115 : vector<1x8x128xf32> to vector<8x128xf32>
    %117 = vector.shape_cast %113 : vector<8x128xf32> to vector<1x8x128xf32>
    tpu.vector_store %arg5[%114, %c0_45, %c0_46], %117 {strides = array<i32>} : memref<8x8x128xf32, #tpu.memory_space<vmem>>, vector<1x8x128xf32>,
    %c4_i32 = arith.constant 4 : i32
    %118 = arith.index_cast %c4_i32 : i32 to index
    %c0_47 = arith.constant 0 : index
    %c0_48 = arith.constant 0 : index
    %119 = vector.load %arg6[%118, %c0_47, %c0_48] : memref<8x8x512xf32, #tpu.memory_space<vmem>>, vector<1x8x512xf32>
    %120 = vector.shape_cast %119 : vector<1x8x512xf32> to vector<8x512xf32>
    %c0_49 = arith.constant 0 : index
    %c0_50 = arith.constant 0 : index
    %121 = vector.load %arg3[%c0_49, %c0_50] : memref<128x512xf32, #tpu.memory_space<vmem>>, vector<128x512xf32>
    %cst_51 = arith.constant dense<0.000000e+00> : vector<8x512xf32>
    %122 = tpu.matmul %113, %121, %cst_51 {dimension_numbers = #tpu.dot_dimension_numbers<[1], [0], [0], [1], [0, 0, 1, 1], [], []>} : vector<8x128xf32>, vector<128x512xf32>, vector<8x512xf32> -> vector<8x512xf32>
    %123 = arith.addf %120, %122 : vector<8x512xf32>
    %124 = vector.extract_strided_slice %123 {offsets = [0, 0], sizes = [8, 384], strides = [1, 1]} : vector<8x512xf32> to vector<8x384xf32>
    %125 = arith.negf %124 : vector<8x384xf32>
    %126 = math.exp %125 : vector<8x384xf32>
    %cst_52 = arith.constant 1.000000e+00 : f32
    %127 = vector.broadcast %cst_52 : f32 to vector<8x384xf32>
    %128 = arith.addf %127, %126 : vector<8x384xf32>
    %129 = arith.divf %127, %128 : vector<8x384xf32>
    %130 = vector.extract_strided_slice %123 {offsets = [0, 384], sizes = [8, 128], strides = [1, 1]} : vector<8x512xf32> to vector<8x128xf32>
    %131 = math.tanh %130 : vector<8x128xf32>
    %132 = vector.extract_strided_slice %129 {offsets = [0, 0], sizes = [8, 128], strides = [1, 1]} : vector<8x384xf32> to vector<8x128xf32>
    %133 = vector.extract_strided_slice %129 {offsets = [0, 128], sizes = [8, 128], strides = [1, 1]} : vector<8x384xf32> to vector<8x128xf32>
    %134 = vector.extract_strided_slice %129 {offsets = [0, 256], sizes = [8, 128], strides = [1, 1]} : vector<8x384xf32> to vector<8x128xf32>
    %135 = arith.mulf %133, %111 : vector<8x128xf32>
    %136 = arith.mulf %132, %131 : vector<8x128xf32>
    %137 = arith.addf %135, %136 : vector<8x128xf32>
    %138 = math.tanh %137 : vector<8x128xf32>
    %139 = arith.mulf %134, %138 : vector<8x128xf32>
    %140 = arith.index_cast %c4_i32 : i32 to index
    %c0_53 = arith.constant 0 : index
    %c0_54 = arith.constant 0 : index
    %141 = vector.load %arg5[%140, %c0_53, %c0_54] : memref<8x8x128xf32, #tpu.memory_space<vmem>>, vector<1x8x128xf32>
    %142 = vector.shape_cast %141 : vector<1x8x128xf32> to vector<8x128xf32>
    %143 = vector.shape_cast %139 : vector<8x128xf32> to vector<1x8x128xf32>
    tpu.vector_store %arg5[%140, %c0_53, %c0_54], %143 {strides = array<i32>} : memref<8x8x128xf32, #tpu.memory_space<vmem>>, vector<1x8x128xf32>,
    %c5_i32 = arith.constant 5 : i32
    %144 = arith.index_cast %c5_i32 : i32 to index
    %c0_55 = arith.constant 0 : index
    %c0_56 = arith.constant 0 : index
    %145 = vector.load %arg6[%144, %c0_55, %c0_56] : memref<8x8x512xf32, #tpu.memory_space<vmem>>, vector<1x8x512xf32>
    %146 = vector.shape_cast %145 : vector<1x8x512xf32> to vector<8x512xf32>
    %c0_57 = arith.constant 0 : index
    %c0_58 = arith.constant 0 : index
    %147 = vector.load %arg3[%c0_57, %c0_58] : memref<128x512xf32, #tpu.memory_space<vmem>>, vector<128x512xf32>
    %cst_59 = arith.constant dense<0.000000e+00> : vector<8x512xf32>
    %148 = tpu.matmul %139, %147, %cst_59 {dimension_numbers = #tpu.dot_dimension_numbers<[1], [0], [0], [1], [0, 0, 1, 1], [], []>} : vector<8x128xf32>, vector<128x512xf32>, vector<8x512xf32> -> vector<8x512xf32>
    %149 = arith.addf %146, %148 : vector<8x512xf32>
    %150 = vector.extract_strided_slice %149 {offsets = [0, 0], sizes = [8, 384], strides = [1, 1]} : vector<8x512xf32> to vector<8x384xf32>
    %151 = arith.negf %150 : vector<8x384xf32>
    %152 = math.exp %151 : vector<8x384xf32>
    %cst_60 = arith.constant 1.000000e+00 : f32
    %153 = vector.broadcast %cst_60 : f32 to vector<8x384xf32>
    %154 = arith.addf %153, %152 : vector<8x384xf32>
    %155 = arith.divf %153, %154 : vector<8x384xf32>
    %156 = vector.extract_strided_slice %149 {offsets = [0, 384], sizes = [8, 128], strides = [1, 1]} : vector<8x512xf32> to vector<8x128xf32>
    %157 = math.tanh %156 : vector<8x128xf32>
    %158 = vector.extract_strided_slice %155 {offsets = [0, 0], sizes = [8, 128], strides = [1, 1]} : vector<8x384xf32> to vector<8x128xf32>
    %159 = vector.extract_strided_slice %155 {offsets = [0, 128], sizes = [8, 128], strides = [1, 1]} : vector<8x384xf32> to vector<8x128xf32>
    %160 = vector.extract_strided_slice %155 {offsets = [0, 256], sizes = [8, 128], strides = [1, 1]} : vector<8x384xf32> to vector<8x128xf32>
    %161 = arith.mulf %159, %137 : vector<8x128xf32>
    %162 = arith.mulf %158, %157 : vector<8x128xf32>
    %163 = arith.addf %161, %162 : vector<8x128xf32>
    %164 = math.tanh %163 : vector<8x128xf32>
    %165 = arith.mulf %160, %164 : vector<8x128xf32>
    %166 = arith.index_cast %c5_i32 : i32 to index
    %c0_61 = arith.constant 0 : index
    %c0_62 = arith.constant 0 : index
    %167 = vector.load %arg5[%166, %c0_61, %c0_62] : memref<8x8x128xf32, #tpu.memory_space<vmem>>, vector<1x8x128xf32>
    %168 = vector.shape_cast %167 : vector<1x8x128xf32> to vector<8x128xf32>
    %169 = vector.shape_cast %165 : vector<8x128xf32> to vector<1x8x128xf32>
    tpu.vector_store %arg5[%166, %c0_61, %c0_62], %169 {strides = array<i32>} : memref<8x8x128xf32, #tpu.memory_space<vmem>>, vector<1x8x128xf32>,
    %c6_i32 = arith.constant 6 : i32
    %170 = arith.index_cast %c6_i32 : i32 to index
    %c0_63 = arith.constant 0 : index
    %c0_64 = arith.constant 0 : index
    %171 = vector.load %arg6[%170, %c0_63, %c0_64] : memref<8x8x512xf32, #tpu.memory_space<vmem>>, vector<1x8x512xf32>
    %172 = vector.shape_cast %171 : vector<1x8x512xf32> to vector<8x512xf32>
    %c0_65 = arith.constant 0 : index
    %c0_66 = arith.constant 0 : index
    %173 = vector.load %arg3[%c0_65, %c0_66] : memref<128x512xf32, #tpu.memory_space<vmem>>, vector<128x512xf32>
    %cst_67 = arith.constant dense<0.000000e+00> : vector<8x512xf32>
    %174 = tpu.matmul %165, %173, %cst_67 {dimension_numbers = #tpu.dot_dimension_numbers<[1], [0], [0], [1], [0, 0, 1, 1], [], []>} : vector<8x128xf32>, vector<128x512xf32>, vector<8x512xf32> -> vector<8x512xf32>
    %175 = arith.addf %172, %174 : vector<8x512xf32>
    %176 = vector.extract_strided_slice %175 {offsets = [0, 0], sizes = [8, 384], strides = [1, 1]} : vector<8x512xf32> to vector<8x384xf32>
    %177 = arith.negf %176 : vector<8x384xf32>
    %178 = math.exp %177 : vector<8x384xf32>
    %cst_68 = arith.constant 1.000000e+00 : f32
    %179 = vector.broadcast %cst_68 : f32 to vector<8x384xf32>
    %180 = arith.addf %179, %178 : vector<8x384xf32>
    %181 = arith.divf %179, %180 : vector<8x384xf32>
    %182 = vector.extract_strided_slice %175 {offsets = [0, 384], sizes = [8, 128], strides = [1, 1]} : vector<8x512xf32> to vector<8x128xf32>
    %183 = math.tanh %182 : vector<8x128xf32>
    %184 = vector.extract_strided_slice %181 {offsets = [0, 0], sizes = [8, 128], strides = [1, 1]} : vector<8x384xf32> to vector<8x128xf32>
    %185 = vector.extract_strided_slice %181 {offsets = [0, 128], sizes = [8, 128], strides = [1, 1]} : vector<8x384xf32> to vector<8x128xf32>
    %186 = vector.extract_strided_slice %181 {offsets = [0, 256], sizes = [8, 128], strides = [1, 1]} : vector<8x384xf32> to vector<8x128xf32>
    %187 = arith.mulf %185, %163 : vector<8x128xf32>
    %188 = arith.mulf %184, %183 : vector<8x128xf32>
    %189 = arith.addf %187, %188 : vector<8x128xf32>
    %190 = math.tanh %189 : vector<8x128xf32>
    %191 = arith.mulf %186, %190 : vector<8x128xf32>
    %192 = arith.index_cast %c6_i32 : i32 to index
    %c0_69 = arith.constant 0 : index
    %c0_70 = arith.constant 0 : index
    %193 = vector.load %arg5[%192, %c0_69, %c0_70] : memref<8x8x128xf32, #tpu.memory_space<vmem>>, vector<1x8x128xf32>
    %194 = vector.shape_cast %193 : vector<1x8x128xf32> to vector<8x128xf32>
    %195 = vector.shape_cast %191 : vector<8x128xf32> to vector<1x8x128xf32>
    tpu.vector_store %arg5[%192, %c0_69, %c0_70], %195 {strides = array<i32>} : memref<8x8x128xf32, #tpu.memory_space<vmem>>, vector<1x8x128xf32>,
    %c7_i32 = arith.constant 7 : i32
    %196 = arith.index_cast %c7_i32 : i32 to index
    %c0_71 = arith.constant 0 : index
    %c0_72 = arith.constant 0 : index
    %197 = vector.load %arg6[%196, %c0_71, %c0_72] : memref<8x8x512xf32, #tpu.memory_space<vmem>>, vector<1x8x512xf32>
    %198 = vector.shape_cast %197 : vector<1x8x512xf32> to vector<8x512xf32>
    %c0_73 = arith.constant 0 : index
    %c0_74 = arith.constant 0 : index
    %199 = vector.load %arg3[%c0_73, %c0_74] : memref<128x512xf32, #tpu.memory_space<vmem>>, vector<128x512xf32>
    %cst_75 = arith.constant dense<0.000000e+00> : vector<8x512xf32>
    %200 = tpu.matmul %191, %199, %cst_75 {dimension_numbers = #tpu.dot_dimension_numbers<[1], [0], [0], [1], [0, 0, 1, 1], [], []>} : vector<8x128xf32>, vector<128x512xf32>, vector<8x512xf32> -> vector<8x512xf32>
    %201 = arith.addf %198, %200 : vector<8x512xf32>
    %202 = vector.extract_strided_slice %201 {offsets = [0, 0], sizes = [8, 384], strides = [1, 1]} : vector<8x512xf32> to vector<8x384xf32>
    %203 = arith.negf %202 : vector<8x384xf32>
    %204 = math.exp %203 : vector<8x384xf32>
    %cst_76 = arith.constant 1.000000e+00 : f32
    %205 = vector.broadcast %cst_76 : f32 to vector<8x384xf32>
    %206 = arith.addf %205, %204 : vector<8x384xf32>
    %207 = arith.divf %205, %206 : vector<8x384xf32>
    %208 = vector.extract_strided_slice %201 {offsets = [0, 384], sizes = [8, 128], strides = [1, 1]} : vector<8x512xf32> to vector<8x128xf32>
    %209 = math.tanh %208 : vector<8x128xf32>
    %210 = vector.extract_strided_slice %207 {offsets = [0, 0], sizes = [8, 128], strides = [1, 1]} : vector<8x384xf32> to vector<8x128xf32>
    %211 = vector.extract_strided_slice %207 {offsets = [0, 128], sizes = [8, 128], strides = [1, 1]} : vector<8x384xf32> to vector<8x128xf32>
    %212 = vector.extract_strided_slice %207 {offsets = [0, 256], sizes = [8, 128], strides = [1, 1]} : vector<8x384xf32> to vector<8x128xf32>
    %213 = arith.mulf %211, %189 : vector<8x128xf32>
    %214 = arith.mulf %210, %209 : vector<8x128xf32>
    %215 = arith.addf %213, %214 : vector<8x128xf32>
    %216 = math.tanh %215 : vector<8x128xf32>
    %217 = arith.mulf %212, %216 : vector<8x128xf32>
    %218 = arith.index_cast %c7_i32 : i32 to index
    %c0_77 = arith.constant 0 : index
    %c0_78 = arith.constant 0 : index
    %219 = vector.load %arg5[%218, %c0_77, %c0_78] : memref<8x8x128xf32, #tpu.memory_space<vmem>>, vector<1x8x128xf32>
    %220 = vector.shape_cast %219 : vector<1x8x128xf32> to vector<8x128xf32>
    %221 = vector.shape_cast %217 : vector<8x128xf32> to vector<1x8x128xf32>
    tpu.vector_store %arg5[%218, %c0_77, %c0_78], %221 {strides = array<i32>} : memref<8x8x128xf32, #tpu.memory_space<vmem>>, vector<1x8x128xf32>,
    %c8_i32 = arith.constant 8 : i32
    %c0_79 = arith.constant 0 : index
    %c0_80 = arith.constant 0 : index
    %222 = vector.load %arg7[%c0_79, %c0_80] : memref<8x128xf32, #tpu.memory_space<vmem>>, vector<8x128xf32>
    tpu.vector_store %arg7[%c0_79, %c0_80], %217 {strides = array<i32>} : memref<8x128xf32, #tpu.memory_space<vmem>>, vector<8x128xf32>,
    %c0_81 = arith.constant 0 : index
    %c0_82 = arith.constant 0 : index
    %223 = vector.load %arg8[%c0_81, %c0_82] : memref<8x128xf32, #tpu.memory_space<vmem>>, vector<8x128xf32>
    tpu.vector_store %arg8[%c0_81, %c0_82], %215 {strides = array<i32>} : memref<8x128xf32, #tpu.memory_space<vmem>>, vector<8x128xf32>,
    return
  }
  func.func @transform_0(%arg0: i32) -> (i32, i32, i32) {
    %c0_i32 = arith.constant 0 : i32
    %c0_i32_0 = arith.constant 0 : i32
    %c0_i32_1 = arith.constant 0 : i32
    return %arg0, %c0_i32, %c0_i32_0 : i32, i32, i32
  }
  func.func @transform_1(%arg0: i32) -> (i32, i32) {
    %c0_i32 = arith.constant 0 : i32
    %c0_i32_0 = arith.constant 0 : i32
    %c0_i32_1 = arith.constant 0 : i32
    return %c0_i32, %c0_i32_0 : i32, i32
  }
  func.func @transform_2(%arg0: i32) -> (i32, i32) {
    %c0_i32 = arith.constant 0 : i32
    %c0_i32_0 = arith.constant 0 : i32
    %c0_i32_1 = arith.constant 0 : i32
    return %c0_i32, %c0_i32_0 : i32, i32
  }
  func.func @transform_3(%arg0: i32) -> (i32, i32) {
    %c0_i32 = arith.constant 0 : i32
    %c0_i32_0 = arith.constant 0 : i32
    %c0_i32_1 = arith.constant 0 : i32
    return %c0_i32, %c0_i32_0 : i32, i32
  }
  func.func @transform_4(%arg0: i32) -> (i32, i32, i32) {
    %c0_i32 = arith.constant 0 : i32
    %c0_i32_0 = arith.constant 0 : i32
    %c0_i32_1 = arith.constant 0 : i32
    return %arg0, %c0_i32, %c0_i32_0 : i32, i32, i32
  }
}

</mosaic_0001>

<bundles_post_ra>
// kernel: lstm_multitask_forward.1
= control target key start
LH: loop header
LB: loop body
LE: loop exit
PB: predicated region body
PF: predicated region fallthrough
CT: control target
= control target key end

     0   :  { %9 = vsyncpa [#allocation6], 0  ;;  %s3080_s15 = smov [#allocation5]   ;;  %s3686_s0 = inlined_call_operand.vmem [shape: f32[8,8,16], index: 0, kind: input, shape index: {}]   ;;  %s3687_s1 = inlined_call_operand.vmem [shape: f32[16,512], index: 1, kind: input, shape index: {}]   ;;  %s3688_s2 = inlined_call_operand.hbm [shape: f32[128,512], index: 2, kind: input, shape index: {}]   ;;  %s3689_s3 = inlined_call_operand.vmem [shape: f32[1,512], index: 3, kind: input, shape index: {}]   ;;  %s3690_s4 = inlined_call_operand.vmem [shape: f32[8,8,128], index: 4, kind: output, shape index: {}]  }
   0x1   :  { %s19_s16 = sshll.u32 %s3080_s15, 4  ;;  %s3056_s19 = scalar_lea.hbm %s3688_s2, 8192  ;;  %s20_s16 = int_to_ptr.vmem [resolvable:$true] %s19_s16 }
   0x2   :  { %p3057_p0 = scmp.ne.s32.totalorder %s3688_s2, %s3056_s19  ;;  %p3060_p1 = scmp.lt.u32.totalorder %s3056_s19, %s3688_s2 }
   0x4   :  { %p3062_p2 = pnand %p3060_p1, %p3057_p0 }
   0x6   :  { %3065 = shalt.err (!%p3062_p2)
}
   0x7   :  { %s3066_s24 = scalar_lea.vmem %s20_s16, 8192  ;;  %p3071_p4 = scmp.lt.s32.totalorder %s20_s16, %s20_s16 }
   0x8   :  { %p3067_p3 = scmp.ne.s32.totalorder %s20_s16, %s3066_s24  ;;  %p3072_p5 = scmp.lt.s32.totalorder %s3066_s24, %s3066_s24 }
   0xa   :  { %p3073_p6 = por %p3072_p5, %p3071_p4 }
   0xc   :  { %p3074_p7 = pnand %p3073_p6, %p3067_p3 }
   0xe   :  { %3077 = shalt.err (!%p3074_p7)
}
   0xf   :  { %s3081_s25 = smov 512   ;;  %s3082_s26 = smov 32  }
  0x10   :  { %25 = dma.hbm_to_vmem [thread:$0]  %s3688_s2, 8192, %s20_s16, [#allocation6], %s3081_s25, %s3081_s25, %s3082_s26  }
  0x11   :  { %3078 = dma.done.wait [#allocation6], 8192  }
  0x12   :  { %3079 = vsyncadd [#allocation6], 4294959104  ;;  %v3083_v0 = vmov 0.0   ;;  %v46_v1 = vld [vmem:[%s3687_s1 + $0x8] sm:$0xff]  ;;  %v48_v3 = vld [vmem:[%s3687_s1 + $0x18] sm:$0xff]  ;;  %vm75_vm0 = vcmask 130048  }
  0x13   :  { %164 = vmatprep.mubr.f32.mxu0 %v3083_v0  ;;  %277 = vmatprep.mubr.f32.mxu1 %v3083_v0  ;;  %v50_v2 = vld [vmem:[%s3687_s1 + $0x28] sm:$0xff]  ;;  %v52_v5 = vld [vmem:[%s3687_s1 + $0x38] sm:$0xff]  ;;  %v45_v6 = vld [vmem:[%s3687_s1] sm:$0xff] }
  0x14   :  { %v2340_v4 = vpack.c.bf16 %v50_v2, %v46_v1  ;;  %v49_v7 = vld [vmem:[%s3687_s1 + $0x20] sm:$0xff]  ;;  %v2344_v8 = vpack.c.bf16 %v52_v5, %v48_v3  ;;  %v47_v10 = vld [vmem:[%s3687_s1 + $0x10] sm:$0xff]  ;;  %v364_v19 = vld [vmem:[#allocation5] sm:$0xff] }
  0x15   :  { %v2342_v9 = vpack.c.bf16 %v49_v7, %v45_v6  ;;  %v51_v11 = vld [vmem:[%s3687_s1 + $0x30] sm:$0xff]  ;;  %v37_v12 = vld [vmem:[%s3686_s0] sm:$0xff]  ;;  %v368_v20 = vld [vmem:[#allocation5 + $0x20] sm:$0xff] }
  0x16   :  { %2341 = vmatprep.subr.bf16.mxu0 %v2340_v4  ;;  %v2346_v13 = vpack.c.bf16 %v51_v11, %v47_v10  ;;  %v365_v14 = vld [vmem:[#allocation5 + $0x8] sm:$0xff]  ;;  %v367_v16 = vld [vmem:[#allocation5 + $0x18] sm:$0xff]  ;;  %2345 = vmatprep.subr.bf16.mxu1 %v2344_v8  ;;  %v3154_v22 = vpack.c.bf16 %v368_v20, %v364_v19  ;;  %v366_v23 = vld [vmem:[#allocation5 + $0x10] sm:$0xff] }
  0x17   :  { %v369_v15 = vld [vmem:[#allocation5 + $0x28] sm:$0xff]  ;;  %2343 = vmatpush1.bf16.msra.mxu0 %v2342_v9  ;;  %v371_v18 = vld [vmem:[#allocation5 + $0x38] sm:$0xff]  ;;  %v370_v24 = vld [vmem:[#allocation5 + $0x30] sm:$0xff] }
  0x18   :  { %v3150_v17 = vpack.c.bf16 %v369_v15, %v365_v14  ;;  %2347 = vmatpush1.bf16.msra.mxu1 %v2346_v13  ;;  %v3152_v21 = vpack.c.bf16 %v371_v18, %v367_v16  ;;  %v3157_v25 = vpack.c.bf16 %v370_v24, %v366_v23  ;;  %v373_v26 = vld [vmem:[#allocation5 + $0x48] sm:$0xff]  ;;  %v375_v28 = vld [vmem:[#allocation5 + $0x58] sm:$0xff]  ;;  %v372_v31 = vld [vmem:[#allocation5 + $0x40] sm:$0xff] }
  0x19   :  { %v377_v27 = vld [vmem:[#allocation5 + $0x68] sm:$0xff]  ;;  %v379_v30 = vld [vmem:[#allocation5 + $0x78] sm:$0xff]  ;;  %v376_v32 = vld [vmem:[#allocation5 + $0x60] sm:$0xff] }
  0x1a   :  { %2349 = vmatprep.subr.bf16.mxu0 %v3150_v17  ;;  %2293 = vmatmul.mubr.msk.f32.vlgmr.msra.gmra.mrb[0].mxu0 %vm75_vm0, %v37_v12  ;;  %v3161_v29 = vpack.c.bf16 %v377_v27, %v373_v26  ;;  %v38_v33 = vld [vmem:[%s3686_s0 + $0x8] sm:$0xff]  ;;  %v3168_v34 = vpack.c.bf16 %v379_v30, %v375_v28  ;;  %v3170_v35 = vpack.c.bf16 %v376_v32, %v372_v31  ;;  %v374_v36 = vld [vmem:[#allocation5 + $0x50] sm:$0xff]  ;;  %v381_v39 = vld [vmem:[#allocation5 + $0x88] sm:$0xff] }
  0x1b   :  { %2381 = vmatprep.subr.bf16.mxu1 %v3152_v21  ;;  %2301 = vmatmul.mubr.msk.f32.vlgmr.msra.gmra.mrb[0].mxu1 %vm75_vm0, %v37_v12  ;;  %v378_v37 = vld [vmem:[#allocation5 + $0x70] sm:$0xff]  ;;  %v385_v40 = vld [vmem:[#allocation5 + $0xa8] sm:$0xff]  ;;  %v383_v41 = vld [vmem:[#allocation5 + $0x98] sm:$0xff] }
  0x1c   :  { %2351 = vmatpush1.bf16.msra.mxu0 %v3154_v22  ;;  %2383 = vmatpush1.bf16.msra.mxu1 %v3157_v25  ;;  %v3174_v38 = vpack.c.bf16 %v378_v37, %v374_v36  ;;  %v3178_v42 = vpack.c.bf16 %v385_v40, %v381_v39  ;;  %v387_v43 = vld [vmem:[#allocation5 + $0xb8] sm:$0xff]  ;;  %v380_v44 = vld [vmem:[#allocation5 + $0x80] sm:$0xff]  ;;  %v39_v46 = vld [vmem:[%s3686_s0 + $0x10] sm:$0xff] }
  0x1d   :  { %170 = vmatprep.mubr.f32.mxu0 %v3083_v0  ;;  %283 = vmatprep.mubr.f32.mxu1 %v3083_v0  ;;  %v384_v45 = vld [vmem:[#allocation5 + $0xa0] sm:$0xff]  ;;  %v3185_v47 = vpack.c.bf16 %v387_v43, %v383_v41  ;;  %v382_v48 = vld [vmem:[#allocation5 + $0x90] sm:$0xff]  ;;  %v389_v51 = vld [vmem:[#allocation5 + $0xc8] sm:$0xff] }
  0x1e   :  { %2353 = vmatprep.subr.bf16.mxu0 %v3161_v29  ;;  %2294 = vmatmul.mubr.msk.f32.gmra.mrb[2].mxu0 %vm75_vm0, %v38_v33  ;;  %v386_v49 = vld [vmem:[#allocation5 + $0xb0] sm:$0xff]  ;;  %v3189_v50 = vpack.c.bf16 %v384_v45, %v380_v44  ;;  %v393_v52 = vld [vmem:[#allocation5 + $0xe8] sm:$0xff]  ;;  %v391_v53 = vld [vmem:[#allocation5 + $0xd8] sm:$0xff] }
  0x1f   :  { %2385 = vmatprep.subr.bf16.mxu1 %v3168_v34  ;;  %2302 = vmatmul.mubr.msk.f32.gmra.mrb[2].mxu1 %vm75_vm0, %v38_v33  ;;  %v3193_v54 = vpack.c.bf16 %v386_v49, %v382_v48  ;;  %v395_v55 = vld [vmem:[#allocation5 + $0xf8] sm:$0xff]  ;;  %v388_v56 = vld [vmem:[#allocation5 + $0xc0] sm:$0xff]  ;;  %v3197_v58 = vpack.c.bf16 %v393_v52, %v389_v51  ;;  %v390_v59 = vld [vmem:[#allocation5 + $0xd0] sm:$0xff] }
  0x20   :  { %2355 = vmatpush1.bf16.msra.mxu0 %v3170_v35  ;;  %2387 = vmatpush1.bf16.msra.mxu1 %v3174_v38  ;;  %v392_v57 = vld [vmem:[#allocation5 + $0xe0] sm:$0xff]  ;;  %v394_v60 = vld [vmem:[#allocation5 + $0xf0] sm:$0xff]  ;;  %v3201_v61 = vpack.c.bf16 %v395_v55, %v391_v53  ;;  %v397_v62 = vld [vmem:[#allocation5 + $0x108] sm:$0xff] }
  0x21   :  { %176 = vmatprep.mubr.f32.mxu0 %v3083_v0  ;;  %289 = vmatprep.mubr.f32.mxu1 %v3083_v0  ;;  %v401_v63 = vld [vmem:[#allocation5 + $0x128] sm:$0xff]  ;;  %v40_v1 = vld [vmem:[%s3686_s0 + $0x18] sm:$0xff]  ;;  %v3208_v2 = vpack.c.bf16 %v392_v57, %v388_v56  ;;  %v399_v3 = vld [vmem:[#allocation5 + $0x118] sm:$0xff]  ;;  %v3212_v5 = vpack.c.bf16 %v394_v60, %v390_v59 }
  0x22   :  { %2357 = vmatprep.subr.bf16.mxu0 %v3178_v42  ;;  %2295 = vmatmul.mubr.msk.f32.gmra.mrb[4].mxu0 %vm75_vm0, %v39_v46  ;;  %v403_v4 = vld [vmem:[#allocation5 + $0x138] sm:$0xff]  ;;  %v396_v6 = vld [vmem:[#allocation5 + $0x100] sm:$0xff]  ;;  %v3216_v8 = vpack.c.bf16 %v401_v63, %v397_v62  ;;  %v398_v9 = vld [vmem:[#allocation5 + $0x110] sm:$0xff] }
  0x23   :  { %2389 = vmatprep.subr.bf16.mxu1 %v3185_v47  ;;  %2303 = vmatmul.mubr.msk.f32.gmra.mrb[4].mxu1 %vm75_vm0, %v39_v46  ;;  %v400_v7 = vld [vmem:[#allocation5 + $0x120] sm:$0xff]  ;;  %v402_v10 = vld [vmem:[#allocation5 + $0x130] sm:$0xff]  ;;  %v3220_v11 = vpack.c.bf16 %v403_v4, %v399_v3  ;;  %v405_v12 = vld [vmem:[#allocation5 + $0x148] sm:$0xff] }
  0x24   :  { %2359 = vmatpush1.bf16.msra.mxu0 %v3189_v50  ;;  %2391 = vmatpush1.bf16.msra.mxu1 %v3193_v54  ;;  %v409_v13 = vld [vmem:[#allocation5 + $0x168] sm:$0xff]  ;;  %v41_v14 = vld [vmem:[%s3686_s0 + $0x20] sm:$0xff]  ;;  %v3227_v15 = vpack.c.bf16 %v400_v7, %v396_v6  ;;  %v3231_v19 = vpack.c.bf16 %v402_v10, %v398_v9  ;;  %v404_v20 = vld [vmem:[#allocation5 + $0x140] sm:$0xff]  ;;  %v55_v7 = vlaneseq }
  0x25   :  { %182 = vmatprep.mubr.f32.mxu0 %v3083_v0  ;;  %295 = vmatprep.mubr.f32.mxu1 %v3083_v0  ;;  %v407_v16 = vld [vmem:[#allocation5 + $0x158] sm:$0xff]  ;;  %v408_v23 = vld [vmem:[#allocation5 + $0x160] sm:$0xff]  ;;  %v3235_v24 = vpack.c.bf16 %v409_v13, %v405_v12  ;;  %v406_v26 = vld [vmem:[#allocation5 + $0x150] sm:$0xff] }
  0x26   :  { %2361 = vmatprep.subr.bf16.mxu0 %v3197_v58  ;;  %2296 = vmatmul.mubr.msk.f32.gmra.mrb[6].mxu0 %vm75_vm0, %v40_v1  ;;  %v411_v18 = vld [vmem:[#allocation5 + $0x178] sm:$0xff]  ;;  %v410_v27 = vld [vmem:[#allocation5 + $0x170] sm:$0xff]  ;;  %v413_v30 = vld [vmem:[#allocation5 + $0x188] sm:$0xff]  ;;  %v3246_v33 = vpack.c.bf16 %v408_v23, %v404_v20  ;;  %v56_v9 = vshrl.u32 %v55_v7, 7 }
  0x27   :  { %2393 = vmatprep.subr.bf16.mxu1 %v3201_v61  ;;  %2304 = vmatmul.mubr.msk.f32.gmra.mrb[6].mxu1 %vm75_vm0, %v40_v1  ;;  %v3239_v28 = vpack.c.bf16 %v411_v18, %v407_v16  ;;  %v417_v31 = vld [vmem:[#allocation5 + $0x1a8] sm:$0xff]  ;;  %v42_v32 = vld [vmem:[%s3686_s0 + $0x28] sm:$0xff]  ;;  %v415_v36 = vld [vmem:[#allocation5 + $0x198] sm:$0xff]  ;;  %v3250_v39 = vpack.c.bf16 %v410_v27, %v406_v26 }
  0x28   :  { %2363 = vmatpush1.bf16.msra.mxu0 %v3208_v2  ;;  %2395 = vmatpush1.bf16.msra.mxu1 %v3212_v5  ;;  %v419_v37 = vld [vmem:[#allocation5 + $0x1b8] sm:$0xff]  ;;  %v412_v40 = vld [vmem:[#allocation5 + $0x180] sm:$0xff]  ;;  %v3254_v43 = vpack.c.bf16 %v417_v31, %v413_v30  ;;  %v414_v44 = vld [vmem:[#allocation5 + $0x190] sm:$0xff]  ;;  %v57_v10 = vsub.s32 0, %v56_v9  ;;  %v61_v13 = vsub.s32 1, %v56_v9  ;;  %v65_v20 = vsub.s32 2, %v56_v9 }
  0x29   :  { %188 = vmatprep.mubr.f32.mxu0 %v3083_v0  ;;  %301 = vmatprep.mubr.f32.mxu1 %v3083_v0  ;;  %v416_v41 = vld [vmem:[#allocation5 + $0x1a0] sm:$0xff]  ;;  %v418_v45 = vld [vmem:[#allocation5 + $0x1b0] sm:$0xff]  ;;  %v3258_v46 = vpack.c.bf16 %v419_v37, %v415_v36  ;;  %v421_v48 = vld [vmem:[#allocation5 + $0x1c8] sm:$0xff]  ;;  %v69_v36 = vsub.s32 3, %v56_v9 }
  0x2a   :  { %2365 = vmatprep.subr.bf16.mxu0 %v3216_v8  ;;  %2297 = vmatmul.mubr.msk.f32.gmra.mrb[8].mxu0 %vm75_vm0, %v41_v14  ;;  %v425_v49 = vld [vmem:[#allocation5 + $0x1e8] sm:$0xff]  ;;  %v3265_v52 = vpack.c.bf16 %v416_v41, %v412_v40  ;;  %v423_v53 = vld [vmem:[#allocation5 + $0x1d8] sm:$0xff]  ;;  %v3269_v56 = vpack.c.bf16 %v418_v45, %v414_v44  ;;  %v420_v57 = vld [vmem:[#allocation5 + $0x1c0] sm:$0xff] }
  0x2b   :  { %2397 = vmatprep.subr.bf16.mxu1 %v3220_v11  ;;  %2305 = vmatmul.mubr.msk.f32.gmra.mrb[8].mxu1 %vm75_vm0, %v41_v14  ;;  %v43_v51 = vld [vmem:[%s3686_s0 + $0x30] sm:$0xff]  ;;  %v427_v55 = vld [vmem:[#allocation5 + $0x1f8] sm:$0xff]  ;;  %v424_v59 = vld [vmem:[#allocation5 + $0x1e0] sm:$0xff]  ;;  %v3273_v60 = vpack.c.bf16 %v425_v49, %v421_v48 }
  0x2c   :  { %2367 = vmatpush1.bf16.msra.mxu0 %v3227_v15  ;;  %2399 = vmatpush1.bf16.msra.mxu1 %v3231_v19  ;;  %v422_v62 = vld [vmem:[#allocation5 + $0x1d0] sm:$0xff]  ;;  %v3277_v1 = vpack.c.bf16 %v427_v55, %v423_v53  ;;  %v3284_v4 = vpack.c.bf16 %v424_v59, %v420_v57  ;;  %v53_v12 = vld [vmem:[%s3689_s3] sm:$0xf] }
  0x2d   :  { %194 = vmatprep.mubr.f32.mxu0 %v3083_v0  ;;  %307 = vmatprep.mubr.f32.mxu1 %v3083_v0  ;;  %v426_v63 = vld [vmem:[#allocation5 + $0x1f0] sm:$0xff]  ;;  %v3340_v14 = vrot.slane %v53_v12, %v57_v10  ;;  %v3342_v16 = vrot.slane %v53_v12, %v61_v13  ;;  %v3346_v31 = vrot.slane %v53_v12, %v65_v20 }
  0x2e   :  { %2369 = vmatprep.subr.bf16.mxu0 %v3235_v24  ;;  %2298 = vmatmul.mubr.msk.f32.gmra.mrb[10].mxu0 %vm75_vm0, %v42_v32  ;;  %v44_v3 = vld [vmem:[%s3686_s0 + $0x38] sm:$0xff]  ;;  %v3288_v6 = vpack.c.bf16 %v426_v63, %v422_v62  ;;  %v3349_v40 = vrot.slane %v53_v12, %v69_v36 }
  0x2f   :  { %2401 = vmatprep.subr.bf16.mxu1 %v3239_v28  ;;  %2306 = vmatmul.mubr.msk.f32.gmra.mrb[10].mxu1 %vm75_vm0, %v42_v32 }
  0x30   :  { %2371 = vmatpush1.bf16.msra.mxu0 %v3246_v33  ;;  %2403 = vmatpush1.bf16.msra.mxu1 %v3250_v39 }
  0x31   :  { %200 = vmatprep.mubr.f32.mxu0 %v3083_v0  ;;  %313 = vmatprep.mubr.f32.mxu1 %v3083_v0 }
  0x32   :  { %2373 = vmatprep.subr.bf16.mxu0 %v3254_v43  ;;  %2299 = vmatmul.mubr.msk.f32.gmra.mrb[12].mxu0 %vm75_vm0, %v43_v51 }
  0x33   :  { %2405 = vmatprep.subr.bf16.mxu1 %v3258_v46  ;;  %2307 = vmatmul.mubr.msk.f32.gmra.mrb[12].mxu1 %vm75_vm0, %v43_v51 }
  0x34   :  { %2375 = vmatpush1.bf16.msra.mxu0 %v3265_v52  ;;  %2407 = vmatpush1.bf16.msra.mxu1 %v3269_v56 }
  0x35   :  { %206 = vmatprep.mubr.f32.mxu0 %v3083_v0  ;;  %319 = vmatprep.mubr.f32.mxu1 %v3083_v0 }
  0x36   :  { %2377 = vmatprep.subr.bf16.mxu0 %v3273_v60  ;;  %2300 = vmatmul.mubr.msk.f32.gmra.mrb[14].mxu0 %vm75_vm0, %v44_v3 }
  0x37   :  { %2409 = vmatprep.subr.bf16.mxu1 %v3277_v1  ;;  %2308 = vmatmul.mubr.msk.f32.gmra.mrb[14].mxu1 %vm75_vm0, %v44_v3 }
  0x38   :  { %2379 = vmatpush1.bf16.msra.mxu0 %v3284_v4  ;;  %2411 = vmatpush1.bf16.msra.mxu1 %v3288_v6 }
  0x39   :  { %492 = vmatprep.mubr.f32.mxu0 %v3083_v0  ;;  %563 = vmatprep.mubr.f32.mxu1 %v3083_v0 }
  0x3a   :  { %2413 = vmatprep.subr.bf16.mxu0 %v3150_v17  ;;  %2445 = vmatprep.subr.bf16.mxu1 %v3152_v21 }
  0x3b   :  { %493 = vmatmul.mubr.f32.vlgmr.msra.gmra.mrb[0].mxu0 %v3083_v0  ;;  %564 = vmatmul.mubr.f32.vlgmr.msra.gmra.mrb[0].mxu1 %v3083_v0 }
  0x3c   :  { %2415 = vmatpush1.bf16.msra.mxu0 %v3154_v22  ;;  %2447 = vmatpush1.bf16.msra.mxu1 %v3157_v25 }
  0x3d   :  { %2417 = vmatprep.subr.bf16.mxu0 %v3161_v29  ;;  %2449 = vmatprep.subr.bf16.mxu1 %v3168_v34 }
  0x3e   :  { %732 = vmatprep.mubr.f32.mxu0 %v3083_v0  ;;  %803 = vmatprep.mubr.f32.mxu1 %v3083_v0 }
  0x40   :  { %2419 = vmatpush1.bf16.msra.mxu0 %v3170_v35  ;;  %2451 = vmatpush1.bf16.msra.mxu1 %v3174_v38 }
  0x41   :  { %2421 = vmatprep.subr.bf16.mxu0 %v3178_v42  ;;  %2453 = vmatprep.subr.bf16.mxu1 %v3185_v47 }
  0x44   :  { %2423 = vmatpush1.bf16.msra.mxu0 %v3189_v50  ;;  %2455 = vmatpush1.bf16.msra.mxu1 %v3193_v54 }
  0x45   :  { %2425 = vmatprep.subr.bf16.mxu0 %v3197_v58  ;;  %2457 = vmatprep.subr.bf16.mxu1 %v3201_v61 }
  0x48   :  { %2427 = vmatpush1.bf16.msra.mxu0 %v3208_v2  ;;  %2459 = vmatpush1.bf16.msra.mxu1 %v3212_v5 }
  0x49   :  { %2429 = vmatprep.subr.bf16.mxu0 %v3216_v8  ;;  %2461 = vmatprep.subr.bf16.mxu1 %v3220_v11 }
  0x4c   :  { %2431 = vmatpush1.bf16.msra.mxu0 %v3227_v15  ;;  %2463 = vmatpush1.bf16.msra.mxu1 %v3231_v19 }
  0x4d   :  { %2433 = vmatprep.subr.bf16.mxu0 %v3235_v24  ;;  %2465 = vmatprep.subr.bf16.mxu1 %v3239_v28 }
  0x50   :  { %2435 = vmatpush1.bf16.msra.mxu0 %v3246_v33  ;;  %2467 = vmatpush1.bf16.msra.mxu1 %v3250_v39 }
  0x51   :  { %2437 = vmatprep.subr.bf16.mxu0 %v3254_v43  ;;  %2469 = vmatprep.subr.bf16.mxu1 %v3258_v46 }
  0x54   :  { %2439 = vmatpush1.bf16.msra.mxu0 %v3265_v52  ;;  %2471 = vmatpush1.bf16.msra.mxu1 %v3269_v56 }
  0x55   :  { %2441 = vmatprep.subr.bf16.mxu0 %v3273_v60  ;;  %2473 = vmatprep.subr.bf16.mxu1 %v3277_v1 }
  0x58   :  { %2443 = vmatpush1.bf16.msra.mxu0 %v3284_v4  ;;  %2475 = vmatpush1.bf16.msra.mxu1 %v3288_v6 }
  0x59   :  { %2477 = vmatprep.subr.bf16.mxu0 %v3150_v17  ;;  %2509 = vmatprep.subr.bf16.mxu1 %v3152_v21 }
 0x10e   :  { %v494_v18 = vpop.f32.mrb[0].mxu0  ;;  %v565_v26 = vpop.f32.mrb[0].mxu1 }
 0x10f   :  { %v2860_v23 = vadd.f32 %v494_v18, %v3340_v14  ;;  %v496_v17 = vpop.f32.mrb[1].mxu0  ;;  %v567_v27 = vpop.f32.mrb[1].mxu1  ;;  %v2876_v37 = vadd.f32 %v565_v26, %v3346_v31 }
 0x110   :  { %v2861_v21 = vadd.f32 %v496_v17, %v3342_v16  ;;  %v2877_v44 = vadd.f32 %v567_v27, %v3349_v40 }
 0x111   :  { %v2309_v30 = vmul.f32 -1.442695, %v2860_v23  ;;  %v2311_v41 = vmul.f32 -1.442695, %v2876_v37 }
 0x112   :  { %v2310_v32 = vmul.f32 -1.442695, %v2861_v21 }
 0x113   :  { %2928 = vpow2.f32 %v2309_v30 }
 0x114   :  { %2930 = vpow2.f32 %v2310_v32 }
 0x115   :  { %2932 = vpow2.f32 %v2311_v41 }
 0x116   :  { %2934 = vtanh.f32 %v2877_v44 }
 0x11d   :  { %v2929_v45 = vpop.eup %2928 }
 0x11e   :  { %v583_v48 = vadd.f32 1.0, %v2929_v45  ;;  %v2931_v49 = vpop.eup %2930 }
 0x11f   :  { %v584_v51 = vadd.f32 1.0, %v2931_v49  ;;  %v2933_v53 = vpop.eup %2932 }
 0x120   :  { %2936 = vrcp.f32 %v583_v48  ;;  %v2935_v55 = vpop.eup %2934  ;;  %v585_v63 = vadd.f32 1.0, %v2933_v53 }
 0x121   :  { %2938 = vrcp.f32 %v584_v51 }
 0x122   :  { %2940 = vrcp.f32 %v585_v63 }
 0x12a   :  { %v2937_v57 = vpop.eup %2936 }
 0x12b   :  { %v594_v59 = vmul.f32 %v2937_v57, %v2935_v55  ;;  %v2939_v62 = vpop.eup %2938  ;;  %v1087_v57 = vld [vmem:[#allocation5 + $0x8] sm:$0xff] }
 0x12c   :  { %v593_v3 = vmul.f32 0.0, %v2939_v62  ;;  %v2941_v9 = vpop.eup %2940  ;;  %v1089_v62 = vld [vmem:[#allocation5 + $0x18] sm:$0xff] }
 0x12e   :  { %v3352_v7 = vadd.f32 %v594_v59, %v593_v3  ;;  %v1091_v59 = vld [vmem:[#allocation5 + $0x28] sm:$0xff]  ;;  %v1093_v3 = vld [vmem:[#allocation5 + $0x38] sm:$0xff] }
 0x12f   :  { %v3403_v63 = vpack.c.bf16 %v1091_v59, %v1087_v57  ;;  %v1345_v57 = vld [vmem:[#allocation5 + $0x90] sm:$0xff] }
 0x130   :  { %2942 = vtanh.f32 %v3352_v7  ;;  %v1349_v59 = vld [vmem:[#allocation5 + $0xb0] sm:$0xff] }
 0x13a   :  { %v2943_v10 = vpop.eup %2942 }
 0x13b   :  { %v597_v12 = vmul.f32 %v2943_v10, %v2941_v9  ;;  %v1090_v9 = vld [vmem:[#allocation5 + $0x20] sm:$0xff]  ;;  %v3405_v10 = vpack.c.bf16 %v1093_v3, %v1089_v62  ;;  %v3479_v62 = vpack.c.bf16 %v1349_v59, %v1345_v57  ;;  %v1352_v3 = vld [vmem:[#allocation5 + $0xc8] sm:$0xff]  ;;  %v1377_v57 = vld [vmem:[#allocation5 + $0x190] sm:$0xff] }
 0x13d   :  { %598 = vst [vmem:[%s3690_s4] sm:$0xff] %v597_v12  ;;  %733 = vmatmul.mubr.f32.vlgmr.msra.gmra.mrb[2].mxu0 %v597_v12  ;;  %804 = vmatmul.mubr.f32.vlgmr.msra.gmra.mrb[2].mxu1 %v597_v12 }
 0x13e   :  { %2479 = vmatpush1.bf16.msra.mxu0 %v3154_v22  ;;  %2511 = vmatpush1.bf16.msra.mxu1 %v3157_v25 }
 0x13f   :  { %2481 = vmatprep.subr.bf16.mxu0 %v3161_v29  ;;  %2513 = vmatprep.subr.bf16.mxu1 %v3168_v34 }
 0x140   :  { %973 = vmatprep.mubr.f32.mxu0 %v3083_v0  ;;  %1044 = vmatprep.mubr.f32.mxu1 %v3083_v0 }
 0x142   :  { %2483 = vmatpush1.bf16.msra.mxu0 %v3170_v35  ;;  %2515 = vmatpush1.bf16.msra.mxu1 %v3174_v38 }
 0x143   :  { %2485 = vmatprep.subr.bf16.mxu0 %v3178_v42  ;;  %2517 = vmatprep.subr.bf16.mxu1 %v3185_v47 }
 0x146   :  { %2487 = vmatpush1.bf16.msra.mxu0 %v3189_v50  ;;  %2519 = vmatpush1.bf16.msra.mxu1 %v3193_v54 }
 0x147   :  { %2489 = vmatprep.subr.bf16.mxu0 %v3197_v58  ;;  %2521 = vmatprep.subr.bf16.mxu1 %v3201_v61 }
 0x14a   :  { %2491 = vmatpush1.bf16.msra.mxu0 %v3208_v2  ;;  %2523 = vmatpush1.bf16.msra.mxu1 %v3212_v5 }
 0x14b   :  { %2493 = vmatprep.subr.bf16.mxu0 %v3216_v8  ;;  %2525 = vmatprep.subr.bf16.mxu1 %v3220_v11 }
 0x14e   :  { %2495 = vmatpush1.bf16.msra.mxu0 %v3227_v15  ;;  %2527 = vmatpush1.bf16.msra.mxu1 %v3231_v19 }
 0x14f   :  { %2497 = vmatprep.subr.bf16.mxu0 %v3235_v24  ;;  %2529 = vmatprep.subr.bf16.mxu1 %v3239_v28 }
 0x152   :  { %2499 = vmatpush1.bf16.msra.mxu0 %v3246_v33  ;;  %2531 = vmatpush1.bf16.msra.mxu1 %v3250_v39 }
 0x153   :  { %2501 = vmatprep.subr.bf16.mxu0 %v3254_v43  ;;  %2533 = vmatprep.subr.bf16.mxu1 %v3258_v46 }
 0x156   :  { %2503 = vmatpush1.bf16.msra.mxu0 %v3265_v52  ;;  %2535 = vmatpush1.bf16.msra.mxu1 %v3269_v56 }
 0x157   :  { %2505 = vmatprep.subr.bf16.mxu0 %v3273_v60  ;;  %2537 = vmatprep.subr.bf16.mxu1 %v3277_v1 }
 0x15a   :  { %2507 = vmatpush1.bf16.msra.mxu0 %v3284_v4  ;;  %2539 = vmatpush1.bf16.msra.mxu1 %v3288_v6 }
 0x15b   :  { %2541 = vmatprep.subr.bf16.mxu0 %v3403_v63  ;;  %2573 = vmatprep.subr.bf16.mxu1 %v3405_v10 }
 0x210   :  { %v734_v22 = vpop.f32.mrb[2].mxu0  ;;  %v805_v25 = vpop.f32.mrb[2].mxu1 }
 0x211   :  { %v2862_v29 = vadd.f32 %v734_v22, %v3340_v14  ;;  %v736_v34 = vpop.f32.mrb[3].mxu0  ;;  %v807_v35 = vpop.f32.mrb[3].mxu1  ;;  %v2878_v20 = vadd.f32 %v805_v25, %v3346_v31  ;;  %v1088_v22 = vld [vmem:[#allocation5 + $0x10] sm:$0xff] }
 0x212   :  { %v2863_v38 = vadd.f32 %v736_v34, %v3342_v16  ;;  %v2879_v23 = vadd.f32 %v807_v35, %v3349_v40  ;;  %v1092_v25 = vld [vmem:[#allocation5 + $0x30] sm:$0xff]  ;;  %v1095_v34 = vld [vmem:[#allocation5 + $0x48] sm:$0xff] }
 0x213   :  { %v2312_v13 = vmul.f32 -1.442695, %v2862_v29  ;;  %v2314_v26 = vmul.f32 -1.442695, %v2878_v20  ;;  %v3410_v29 = vpack.c.bf16 %v1092_v25, %v1088_v22  ;;  %v1099_v35 = vld [vmem:[#allocation5 + $0x68] sm:$0xff]  ;;  %v1094_v20 = vld [vmem:[#allocation5 + $0x40] sm:$0xff] }
 0x214   :  { %v2313_v18 = vmul.f32 -1.442695, %v2863_v38  ;;  %v1097_v38 = vld [vmem:[#allocation5 + $0x58] sm:$0xff] }
 0x215   :  { %2944 = vpow2.f32 %v2312_v13  ;;  %v3415_v13 = vpack.c.bf16 %v1099_v35, %v1095_v34  ;;  %v1358_v25 = vld [vmem:[#allocation5 + $0xf8] sm:$0xff]  ;;  %v1351_v34 = vld [vmem:[#allocation5 + $0xc0] sm:$0xff] }
 0x216   :  { %2946 = vpow2.f32 %v2313_v18  ;;  %v1101_v18 = vld [vmem:[#allocation5 + $0x78] sm:$0xff]  ;;  %v1355_v35 = vld [vmem:[#allocation5 + $0xe0] sm:$0xff] }
 0x217   :  { %2948 = vtanh.f32 %v2879_v23  ;;  %v1098_v23 = vld [vmem:[#allocation5 + $0x60] sm:$0xff] }
 0x218   :  { %2950 = vpow2.f32 %v2314_v26  ;;  %v3417_v26 = vpack.c.bf16 %v1101_v18, %v1097_v38  ;;  %v3488_v18 = vpack.c.bf16 %v1355_v35, %v1351_v34  ;;  %v1386_v35 = vld [vmem:[#allocation5 + $0x1d8] sm:$0xff] }
 0x21f   :  { %v2945_v17 = vpop.eup %2944 }
 0x220   :  { %v823_v21 = vadd.f32 1.0, %v2945_v17  ;;  %v2947_v27 = vpop.eup %2946  ;;  %v3419_v17 = vpack.c.bf16 %v1098_v23, %v1094_v20  ;;  %v1353_v20 = vld [vmem:[#allocation5 + $0xd0] sm:$0xff] }
 0x221   :  { %v824_v30 = vadd.f32 1.0, %v2947_v27  ;;  %v2949_v32 = vpop.eup %2948  ;;  %v1100_v27 = vld [vmem:[#allocation5 + $0x70] sm:$0xff] }
 0x222   :  { %2952 = vrcp.f32 %v823_v21  ;;  %v2951_v36 = vpop.eup %2950  ;;  %v1096_v21 = vld [vmem:[#allocation5 + $0x50] sm:$0xff] }
 0x223   :  { %2954 = vrcp.f32 %v824_v30  ;;  %v825_v45 = vadd.f32 1.0, %v2951_v36  ;;  %v3422_v30 = vpack.c.bf16 %v1100_v27, %v1096_v21  ;;  %v1357_v23 = vld [vmem:[#allocation5 + $0xf0] sm:$0xff]  ;;  %v1360_v27 = vld [vmem:[#allocation5 + $0x108] sm:$0xff] }
 0x224   :  { %v3491_v21 = vpack.c.bf16 %v1357_v23, %v1353_v20  ;;  %v1390_v20 = vld [vmem:[#allocation5 + $0x1f8] sm:$0xff]  ;;  %v1383_v23 = vld [vmem:[#allocation5 + $0x1c0] sm:$0xff] }
 0x225   :  { %2956 = vrcp.f32 %v825_v45 }
 0x22c   :  { %v2953_v37 = vpop.eup %2952 }
 0x22d   :  { %v834_v41 = vmul.f32 %v2953_v37, %v2949_v32  ;;  %v2955_v44 = vpop.eup %2954  ;;  %v1344_v37 = vld [vmem:[#allocation5 + $0x88] sm:$0xff] }
 0x22e   :  { %v833_v48 = vmul.f32 %v2955_v44, %v3352_v7  ;;  %v1086_v7 = vld [vmem:[#allocation5] sm:$0xff]  ;;  %v1346_v44 = vld [vmem:[#allocation5 + $0x98] sm:$0xff] }
 0x22f   :  { %v2957_v51 = vpop.eup %2956  ;;  %v3407_v12 = vpack.c.bf16 %v1090_v9, %v1086_v7  ;;  %v1356_v7 = vld [vmem:[#allocation5 + $0xe8] sm:$0xff]  ;;  %v1354_v9 = vld [vmem:[#allocation5 + $0xd8] sm:$0xff] }
 0x230   :  { %v3395_v49 = vadd.f32 %v834_v41, %v833_v48  ;;  %v1348_v41 = vld [vmem:[#allocation5 + $0xa8] sm:$0xff]  ;;  %v1350_v48 = vld [vmem:[#allocation5 + $0xb8] sm:$0xff]  ;;  %v3484_v22 = vpack.c.bf16 %v1356_v7, %v1352_v3  ;;  %v3486_v38 = vpack.c.bf16 %v1358_v25, %v1354_v9  ;;  %v1381_v3 = vld [vmem:[#allocation5 + $0x1b0] sm:$0xff] }
 0x231   :  { %v3472_v45 = vpack.c.bf16 %v1348_v41, %v1344_v37  ;;  %v1378_v37 = vld [vmem:[#allocation5 + $0x198] sm:$0xff]  ;;  %v1384_v7 = vld [vmem:[#allocation5 + $0x1c8] sm:$0xff]  ;;  %v3528_v25 = vpack.c.bf16 %v1381_v3, %v1377_v57 }
 0x232   :  { %2958 = vtanh.f32 %v3395_v49  ;;  %v1382_v41 = vld [vmem:[#allocation5 + $0x1b8] sm:$0xff]  ;;  %v1388_v9 = vld [vmem:[#allocation5 + $0x1e8] sm:$0xff] }
 0x233   :  { %v3530_v34 = vpack.c.bf16 %v1388_v9, %v1384_v7 }
 0x23c   :  { %v2959_v53 = vpop.eup %2958 }
 0x23d   :  { %v837_v55 = vmul.f32 %v2959_v53, %v2957_v51  ;;  %v1347_v51 = vld [vmem:[#allocation5 + $0xa0] sm:$0xff]  ;;  %v3474_v53 = vpack.c.bf16 %v1350_v48, %v1346_v44  ;;  %v3521_v48 = vpack.c.bf16 %v1382_v41, %v1378_v37 }
 0x23f   :  { %2315 = vst [vmem:[%s3690_s4 + $0x8] sm:$0xff] %v837_v55  ;;  %974 = vmatmul.mubr.f32.vlgmr.msra.gmra.mrb[4].mxu0 %v837_v55  ;;  %1045 = vmatmul.mubr.f32.vlgmr.msra.gmra.mrb[4].mxu1 %v837_v55 }
 0x240   :  { %1214 = vmatprep.mubr.f32.mxu0 %v3083_v0  ;;  %1285 = vmatprep.mubr.f32.mxu1 %v3083_v0 }
 0x241   :  { %2543 = vmatpush1.bf16.msra.mxu0 %v3407_v12  ;;  %2575 = vmatpush1.bf16.msra.mxu1 %v3410_v29 }
 0x242   :  { %2545 = vmatprep.subr.bf16.mxu0 %v3415_v13  ;;  %2577 = vmatprep.subr.bf16.mxu1 %v3417_v26 }
 0x245   :  { %2547 = vmatpush1.bf16.msra.mxu0 %v3419_v17  ;;  %2579 = vmatpush1.bf16.msra.mxu1 %v3422_v30 }
 0x246   :  { %2549 = vmatprep.subr.bf16.mxu0 %v3178_v42  ;;  %2581 = vmatprep.subr.bf16.mxu1 %v3185_v47 }
 0x249   :  { %2551 = vmatpush1.bf16.msra.mxu0 %v3189_v50  ;;  %2583 = vmatpush1.bf16.msra.mxu1 %v3193_v54 }
 0x24a   :  { %2553 = vmatprep.subr.bf16.mxu0 %v3197_v58  ;;  %2585 = vmatprep.subr.bf16.mxu1 %v3201_v61 }
 0x24d   :  { %2555 = vmatpush1.bf16.msra.mxu0 %v3208_v2  ;;  %2587 = vmatpush1.bf16.msra.mxu1 %v3212_v5 }
 0x24e   :  { %2557 = vmatprep.subr.bf16.mxu0 %v3216_v8  ;;  %2589 = vmatprep.subr.bf16.mxu1 %v3220_v11 }
 0x251   :  { %2559 = vmatpush1.bf16.msra.mxu0 %v3227_v15  ;;  %2591 = vmatpush1.bf16.msra.mxu1 %v3231_v19 }
 0x252   :  { %2561 = vmatprep.subr.bf16.mxu0 %v3235_v24  ;;  %2593 = vmatprep.subr.bf16.mxu1 %v3239_v28 }
 0x255   :  { %2563 = vmatpush1.bf16.msra.mxu0 %v3246_v33  ;;  %2595 = vmatpush1.bf16.msra.mxu1 %v3250_v39 }
 0x256   :  { %2565 = vmatprep.subr.bf16.mxu0 %v3254_v43  ;;  %2597 = vmatprep.subr.bf16.mxu1 %v3258_v46 }
 0x259   :  { %2567 = vmatpush1.bf16.msra.mxu0 %v3265_v52  ;;  %2599 = vmatpush1.bf16.msra.mxu1 %v3269_v56 }
 0x25a   :  { %2569 = vmatprep.subr.bf16.mxu0 %v3273_v60  ;;  %2601 = vmatprep.subr.bf16.mxu1 %v3277_v1 }
 0x25d   :  { %2571 = vmatpush1.bf16.msra.mxu0 %v3284_v4  ;;  %2603 = vmatpush1.bf16.msra.mxu1 %v3288_v6 }
 0x25e   :  { %2605 = vmatprep.subr.bf16.mxu0 %v3403_v63  ;;  %2637 = vmatprep.subr.bf16.mxu1 %v3405_v10 }
 0x312   :  { %v975_v42 = vpop.f32.mrb[4].mxu0  ;;  %v1046_v47 = vpop.f32.mrb[4].mxu1 }
 0x313   :  { %v2864_v50 = vadd.f32 %v975_v42, %v3340_v14  ;;  %v977_v54 = vpop.f32.mrb[5].mxu0  ;;  %v1048_v58 = vpop.f32.mrb[5].mxu1  ;;  %v2880_v8 = vadd.f32 %v1046_v47, %v3346_v31  ;;  %v1364_v42 = vld [vmem:[#allocation5 + $0x128] sm:$0xff]  ;;  %v1362_v47 = vld [vmem:[#allocation5 + $0x118] sm:$0xff] }
 0x314   :  { %v2865_v61 = vadd.f32 %v977_v54, %v3342_v16  ;;  %v2881_v11 = vadd.f32 %v1048_v58, %v3349_v40  ;;  %v1366_v54 = vld [vmem:[#allocation5 + $0x138] sm:$0xff]  ;;  %v1359_v58 = vld [vmem:[#allocation5 + $0x100] sm:$0xff] }
 0x315   :  { %v2316_v2 = vmul.f32 -1.442695, %v2864_v50  ;;  %v2318_v15 = vmul.f32 -1.442695, %v2880_v8  ;;  %v3496_v50 = vpack.c.bf16 %v1364_v42, %v1360_v27  ;;  %v1361_v8 = vld [vmem:[#allocation5 + $0x110] sm:$0xff]  ;;  %v3532_v27 = vpack.c.bf16 %v1390_v20, %v1386_v35  ;;  %v1387_v42 = vld [vmem:[#allocation5 + $0x1e0] sm:$0xff] }
 0x316   :  { %v2317_v5 = vmul.f32 -1.442695, %v2865_v61  ;;  %v1363_v61 = vld [vmem:[#allocation5 + $0x120] sm:$0xff] }
 0x317   :  { %2960 = vpow2.f32 %v2316_v2  ;;  %v3498_v2 = vpack.c.bf16 %v1366_v54, %v1362_v47  ;;  %v1385_v47 = vld [vmem:[#allocation5 + $0x1d0] sm:$0xff] }
 0x318   :  { %2962 = vpow2.f32 %v2317_v5  ;;  %v3500_v5 = vpack.c.bf16 %v1363_v61, %v1359_v58  ;;  %v1389_v54 = vld [vmem:[#allocation5 + $0x1f0] sm:$0xff]  ;;  %v3535_v58 = vpack.c.bf16 %v1387_v42, %v1383_v23 }
 0x319   :  { %2964 = vtanh.f32 %v2881_v11  ;;  %v1365_v11 = vld [vmem:[#allocation5 + $0x130] sm:$0xff]  ;;  %v3539_v61 = vpack.c.bf16 %v1389_v54, %v1385_v47 }
 0x31a   :  { %2966 = vpow2.f32 %v2318_v15  ;;  %v3503_v15 = vpack.c.bf16 %v1365_v11, %v1361_v8 }
 0x321   :  { %v2961_v19 = vpop.eup %2960 }
 0x322   :  { %v1064_v24 = vadd.f32 1.0, %v2961_v19  ;;  %v2963_v28 = vpop.eup %2962  ;;  %v1368_v19 = vld [vmem:[#allocation5 + $0x148] sm:$0xff] }
 0x323   :  { %v1065_v33 = vadd.f32 1.0, %v2963_v28  ;;  %v2965_v39 = vpop.eup %2964  ;;  %v1370_v28 = vld [vmem:[#allocation5 + $0x158] sm:$0xff] }
 0x324   :  { %2968 = vrcp.f32 %v1064_v24  ;;  %v2967_v43 = vpop.eup %2966  ;;  %v1372_v24 = vld [vmem:[#allocation5 + $0x168] sm:$0xff] }
 0x325   :  { %2970 = vrcp.f32 %v1065_v33  ;;  %v1066_v60 = vadd.f32 1.0, %v2967_v43  ;;  %v3508_v33 = vpack.c.bf16 %v1372_v24, %v1368_v19  ;;  %v1367_v43 = vld [vmem:[#allocation5 + $0x140] sm:$0xff] }
 0x327   :  { %2972 = vrcp.f32 %v1066_v60  ;;  %v1369_v60 = vld [vmem:[#allocation5 + $0x150] sm:$0xff] }
 0x32e   :  { %v2969_v46 = vpop.eup %2968 }
 0x32f   :  { %v1075_v52 = vmul.f32 %v2969_v46, %v2965_v39  ;;  %v2971_v56 = vpop.eup %2970  ;;  %v1374_v39 = vld [vmem:[#allocation5 + $0x178] sm:$0xff]  ;;  %v1371_v46 = vld [vmem:[#allocation5 + $0x160] sm:$0xff] }
 0x330   :  { %v1074_v1 = vmul.f32 %v2971_v56, %v3395_v49  ;;  %v1343_v49 = vld [vmem:[#allocation5 + $0x80] sm:$0xff]  ;;  %v3512_v56 = vpack.c.bf16 %v1371_v46, %v1367_v43 }
 0x331   :  { %v2973_v6 = vpop.eup %2972  ;;  %v3476_v55 = vpack.c.bf16 %v1347_v51, %v1343_v49  ;;  %v1375_v49 = vld [vmem:[#allocation5 + $0x180] sm:$0xff] }
 0x332   :  { %v3458_v4 = vadd.f32 %v1075_v52, %v1074_v1  ;;  %v3510_v52 = vpack.c.bf16 %v1374_v39, %v1370_v28  ;;  %v1373_v1 = vld [vmem:[#allocation5 + $0x170] sm:$0xff]  ;;  %v1379_v51 = vld [vmem:[#allocation5 + $0x1a0] sm:$0xff] }
 0x333   :  { %v3524_v59 = vpack.c.bf16 %v1379_v51, %v1375_v49 }
 0x334   :  { %2974 = vtanh.f32 %v3458_v4 }
 0x33e   :  { %v2975_v32 = vpop.eup %2974 }
 0x33f   :  { %v1078_v36 = vmul.f32 %v2975_v32, %v2973_v6  ;;  %v1376_v6 = vld [vmem:[#allocation5 + $0x188] sm:$0xff]  ;;  %v3515_v32 = vpack.c.bf16 %v1373_v1, %v1369_v60 }
 0x341   :  { %2319 = vst [vmem:[%s3690_s4 + $0x10] sm:$0xff] %v1078_v36  ;;  %1215 = vmatmul.mubr.f32.vlgmr.msra.gmra.mrb[6].mxu0 %v1078_v36  ;;  %1286 = vmatmul.mubr.f32.vlgmr.msra.gmra.mrb[6].mxu1 %v1078_v36  ;;  %v1380_v36 = vld [vmem:[#allocation5 + $0x1a8] sm:$0xff] }
 0x342   :  { %2607 = vmatpush1.bf16.msra.mxu0 %v3407_v12  ;;  %2639 = vmatpush1.bf16.msra.mxu1 %v3410_v29  ;;  %v3519_v44 = vpack.c.bf16 %v1380_v36, %v1376_v6 }
 0x343   :  { %2609 = vmatprep.subr.bf16.mxu0 %v3415_v13  ;;  %2641 = vmatprep.subr.bf16.mxu1 %v3417_v26 }
 0x344   :  { %1455 = vmatprep.mubr.f32.mxu0 %v3083_v0  ;;  %1526 = vmatprep.mubr.f32.mxu1 %v3083_v0 }
 0x346   :  { %2611 = vmatpush1.bf16.msra.mxu0 %v3419_v17  ;;  %2643 = vmatpush1.bf16.msra.mxu1 %v3422_v30 }
 0x347   :  { %2613 = vmatprep.subr.bf16.mxu0 %v3472_v45  ;;  %2645 = vmatprep.subr.bf16.mxu1 %v3474_v53 }
 0x34a   :  { %2615 = vmatpush1.bf16.msra.mxu0 %v3476_v55  ;;  %2647 = vmatpush1.bf16.msra.mxu1 %v3479_v62 }
 0x34b   :  { %2617 = vmatprep.subr.bf16.mxu0 %v3484_v22  ;;  %2649 = vmatprep.subr.bf16.mxu1 %v3486_v38 }
 0x34e   :  { %2619 = vmatpush1.bf16.msra.mxu0 %v3488_v18  ;;  %2651 = vmatpush1.bf16.msra.mxu1 %v3491_v21 }
 0x34f   :  { %2621 = vmatprep.subr.bf16.mxu0 %v3496_v50  ;;  %2653 = vmatprep.subr.bf16.mxu1 %v3498_v2 }
 0x352   :  { %2623 = vmatpush1.bf16.msra.mxu0 %v3500_v5  ;;  %2655 = vmatpush1.bf16.msra.mxu1 %v3503_v15 }
 0x353   :  { %2625 = vmatprep.subr.bf16.mxu0 %v3508_v33  ;;  %2657 = vmatprep.subr.bf16.mxu1 %v3510_v52 }
 0x356   :  { %2627 = vmatpush1.bf16.msra.mxu0 %v3512_v56  ;;  %2659 = vmatpush1.bf16.msra.mxu1 %v3515_v32 }
 0x357   :  { %2629 = vmatprep.subr.bf16.mxu0 %v3519_v44  ;;  %2661 = vmatprep.subr.bf16.mxu1 %v3521_v48 }
 0x35a   :  { %2631 = vmatpush1.bf16.msra.mxu0 %v3524_v59  ;;  %2663 = vmatpush1.bf16.msra.mxu1 %v3528_v25 }
 0x35b   :  { %2633 = vmatprep.subr.bf16.mxu0 %v3530_v34  ;;  %2665 = vmatprep.subr.bf16.mxu1 %v3532_v27 }
 0x35e   :  { %2635 = vmatpush1.bf16.msra.mxu0 %v3535_v58  ;;  %2667 = vmatpush1.bf16.msra.mxu1 %v3539_v61 }
 0x35f   :  { %2669 = vmatprep.subr.bf16.mxu0 %v3403_v63  ;;  %2701 = vmatprep.subr.bf16.mxu1 %v3405_v10 }
 0x414   :  { %v1216_v8 = vpop.f32.mrb[6].mxu0  ;;  %v1287_v11 = vpop.f32.mrb[6].mxu1 }
 0x415   :  { %v2866_v19 = vadd.f32 %v1216_v8, %v3340_v14  ;;  %v1218_v24 = vpop.f32.mrb[7].mxu0  ;;  %v1289_v28 = vpop.f32.mrb[7].mxu1  ;;  %v2882_v60 = vadd.f32 %v1287_v11, %v3346_v31 }
 0x416   :  { %v2867_v39 = vadd.f32 %v1218_v24, %v3342_v16  ;;  %v2883_v1 = vadd.f32 %v1289_v28, %v3349_v40 }
 0x417   :  { %v2320_v43 = vmul.f32 -1.442695, %v2866_v19  ;;  %v2322_v6 = vmul.f32 -1.442695, %v2882_v60 }
 0x418   :  { %v2321_v46 = vmul.f32 -1.442695, %v2867_v39 }
 0x419   :  { %2976 = vpow2.f32 %v2320_v43 }
 0x41a   :  { %2978 = vpow2.f32 %v2321_v46 }
 0x41b   :  { %2980 = vtanh.f32 %v2883_v1 }
 0x41c   :  { %2982 = vpow2.f32 %v2322_v6 }
 0x423   :  { %v2977_v36 = vpop.eup %2976 }
 0x424   :  { %v1305_v37 = vadd.f32 1.0, %v2977_v36  ;;  %v2979_v41 = vpop.eup %2978 }
 0x425   :  { %v1306_v49 = vadd.f32 1.0, %v2979_v41  ;;  %v2981_v51 = vpop.eup %2980 }
 0x426   :  { %2984 = vrcp.f32 %v1305_v37  ;;  %v2983_v57 = vpop.eup %2982 }
 0x427   :  { %2986 = vrcp.f32 %v1306_v49  ;;  %v1307_v35 = vadd.f32 1.0, %v2983_v57 }
 0x429   :  { %2988 = vrcp.f32 %v1307_v35 }
 0x430   :  { %v2985_v3 = vpop.eup %2984 }
 0x431   :  { %v1316_v7 = vmul.f32 %v2985_v3, %v2981_v51  ;;  %v2987_v9 = vpop.eup %2986 }
 0x432   :  { %v1315_v20 = vmul.f32 %v2987_v9, %v3458_v4 }
 0x433   :  { %v2989_v42 = vpop.eup %2988 }
 0x434   :  { %v3551_v23 = vadd.f32 %v1316_v7, %v1315_v20 }
 0x436   :  { %2990 = vtanh.f32 %v3551_v23 }
 0x440   :  { %v2991_v47 = vpop.eup %2990 }
 0x441   :  { %v1319_v54 = vmul.f32 %v2991_v47, %v2989_v42 }
 0x443   :  { %2323 = vst [vmem:[%s3690_s4 + $0x18] sm:$0xff] %v1319_v54  ;;  %1456 = vmatmul.mubr.f32.vlgmr.msra.gmra.mrb[8].mxu0 %v1319_v54  ;;  %1527 = vmatmul.mubr.f32.vlgmr.msra.gmra.mrb[8].mxu1 %v1319_v54 }
 0x444   :  { %2671 = vmatpush1.bf16.msra.mxu0 %v3407_v12  ;;  %2703 = vmatpush1.bf16.msra.mxu1 %v3410_v29 }
 0x445   :  { %2673 = vmatprep.subr.bf16.mxu0 %v3415_v13  ;;  %2705 = vmatprep.subr.bf16.mxu1 %v3417_v26 }
 0x446   :  { %1696 = vmatprep.mubr.f32.mxu0 %v3083_v0  ;;  %1767 = vmatprep.mubr.f32.mxu1 %v3083_v0 }
 0x448   :  { %2675 = vmatpush1.bf16.msra.mxu0 %v3419_v17  ;;  %2707 = vmatpush1.bf16.msra.mxu1 %v3422_v30 }
 0x449   :  { %2677 = vmatprep.subr.bf16.mxu0 %v3472_v45  ;;  %2709 = vmatprep.subr.bf16.mxu1 %v3474_v53 }
 0x44c   :  { %2679 = vmatpush1.bf16.msra.mxu0 %v3476_v55  ;;  %2711 = vmatpush1.bf16.msra.mxu1 %v3479_v62 }
 0x44d   :  { %2681 = vmatprep.subr.bf16.mxu0 %v3484_v22  ;;  %2713 = vmatprep.subr.bf16.mxu1 %v3486_v38 }
 0x450   :  { %2683 = vmatpush1.bf16.msra.mxu0 %v3488_v18  ;;  %2715 = vmatpush1.bf16.msra.mxu1 %v3491_v21 }
 0x451   :  { %2685 = vmatprep.subr.bf16.mxu0 %v3496_v50  ;;  %2717 = vmatprep.subr.bf16.mxu1 %v3498_v2 }
 0x454   :  { %2687 = vmatpush1.bf16.msra.mxu0 %v3500_v5  ;;  %2719 = vmatpush1.bf16.msra.mxu1 %v3503_v15 }
 0x455   :  { %2689 = vmatprep.subr.bf16.mxu0 %v3508_v33  ;;  %2721 = vmatprep.subr.bf16.mxu1 %v3510_v52 }
 0x458   :  { %2691 = vmatpush1.bf16.msra.mxu0 %v3512_v56  ;;  %2723 = vmatpush1.bf16.msra.mxu1 %v3515_v32 }
 0x459   :  { %2693 = vmatprep.subr.bf16.mxu0 %v3519_v44  ;;  %2725 = vmatprep.subr.bf16.mxu1 %v3521_v48 }
 0x45c   :  { %2695 = vmatpush1.bf16.msra.mxu0 %v3524_v59  ;;  %2727 = vmatpush1.bf16.msra.mxu1 %v3528_v25 }
 0x45d   :  { %2697 = vmatprep.subr.bf16.mxu0 %v3530_v34  ;;  %2729 = vmatprep.subr.bf16.mxu1 %v3532_v27 }
 0x460   :  { %2699 = vmatpush1.bf16.msra.mxu0 %v3535_v58  ;;  %2731 = vmatpush1.bf16.msra.mxu1 %v3539_v61 }
 0x461   :  { %2733 = vmatprep.subr.bf16.mxu0 %v3403_v63  ;;  %2765 = vmatprep.subr.bf16.mxu1 %v3405_v10 }
 0x516   :  { %v1457_v4 = vpop.f32.mrb[8].mxu0  ;;  %v1528_v8 = vpop.f32.mrb[8].mxu1 }
 0x517   :  { %v2868_v11 = vadd.f32 %v1457_v4, %v3340_v14  ;;  %v1459_v19 = vpop.f32.mrb[9].mxu0  ;;  %v1530_v24 = vpop.f32.mrb[9].mxu1  ;;  %v2884_v46 = vadd.f32 %v1528_v8, %v3346_v31 }
 0x518   :  { %v2869_v28 = vadd.f32 %v1459_v19, %v3342_v16  ;;  %v2885_v60 = vadd.f32 %v1530_v24, %v3349_v40 }
 0x519   :  { %v2324_v39 = vmul.f32 -1.442695, %v2868_v11  ;;  %v2326_v1 = vmul.f32 -1.442695, %v2884_v46 }
 0x51a   :  { %v2325_v43 = vmul.f32 -1.442695, %v2869_v28 }
 0x51b   :  { %2992 = vpow2.f32 %v2324_v39 }
 0x51c   :  { %2994 = vpow2.f32 %v2325_v43 }
 0x51d   :  { %2996 = vtanh.f32 %v2885_v60 }
 0x51e   :  { %2998 = vpow2.f32 %v2326_v1 }
 0x525   :  { %v2993_v63 = vpop.eup %2992 }
 0x526   :  { %v1546_v6 = vadd.f32 1.0, %v2993_v63  ;;  %v2995_v10 = vpop.eup %2994 }
 0x527   :  { %v1547_v36 = vadd.f32 1.0, %v2995_v10  ;;  %v2997_v37 = vpop.eup %2996 }
 0x528   :  { %3000 = vrcp.f32 %v1546_v6  ;;  %v2999_v41 = vpop.eup %2998 }
 0x529   :  { %3002 = vrcp.f32 %v1547_v36  ;;  %v1548_v3 = vadd.f32 1.0, %v2999_v41 }
 0x52b   :  { %3004 = vrcp.f32 %v1548_v3 }
 0x532   :  { %v3001_v49 = vpop.eup %3000 }
 0x533   :  { %v1557_v51 = vmul.f32 %v3001_v49, %v2997_v37  ;;  %v3003_v57 = vpop.eup %3002  ;;  %v2051_v49 = vld [vmem:[#allocation5 + $0x8] sm:$0xff] }
 0x534   :  { %v1556_v7 = vmul.f32 %v3003_v57, %v3551_v23  ;;  %v2053_v57 = vld [vmem:[#allocation5 + $0x18] sm:$0xff] }
 0x535   :  { %v3005_v35 = vpop.eup %3004 }
 0x536   :  { %v3596_v9 = vadd.f32 %v1557_v51, %v1556_v7  ;;  %v2055_v51 = vld [vmem:[#allocation5 + $0x28] sm:$0xff]  ;;  %v2057_v7 = vld [vmem:[#allocation5 + $0x38] sm:$0xff] }
 0x537   :  { %v2796_v3 = vpack.c.bf16 %v2055_v51, %v2051_v49 }
 0x538   :  { %3006 = vtanh.f32 %v3596_v9 }
 0x542   :  { %v3007_v20 = vpop.eup %3006 }
 0x543   :  { %v1560_v42 = vmul.f32 %v3007_v20, %v3005_v35  ;;  %v2054_v35 = vld [vmem:[#allocation5 + $0x20] sm:$0xff]  ;;  %v2828_v20 = vpack.c.bf16 %v2057_v7, %v2053_v57 }
 0x545   :  { %2327 = vst [vmem:[%s3690_s4 + $0x20] sm:$0xff] %v1560_v42  ;;  %1697 = vmatmul.mubr.f32.vlgmr.msra.gmra.mrb[10].mxu0 %v1560_v42  ;;  %1768 = vmatmul.mubr.f32.vlgmr.msra.gmra.mrb[10].mxu1 %v1560_v42 }
 0x546   :  { %2735 = vmatpush1.bf16.msra.mxu0 %v3407_v12  ;;  %2767 = vmatpush1.bf16.msra.mxu1 %v3410_v29 }
 0x547   :  { %2737 = vmatprep.subr.bf16.mxu0 %v3415_v13  ;;  %2769 = vmatprep.subr.bf16.mxu1 %v3417_v26 }
 0x548   :  { %1937 = vmatprep.mubr.f32.mxu0 %v3083_v0  ;;  %2008 = vmatprep.mubr.f32.mxu1 %v3083_v0 }
 0x54a   :  { %2739 = vmatpush1.bf16.msra.mxu0 %v3419_v17  ;;  %2771 = vmatpush1.bf16.msra.mxu1 %v3422_v30 }
 0x54b   :  { %2741 = vmatprep.subr.bf16.mxu0 %v3472_v45  ;;  %2773 = vmatprep.subr.bf16.mxu1 %v3474_v53 }
 0x54e   :  { %2743 = vmatpush1.bf16.msra.mxu0 %v3476_v55  ;;  %2775 = vmatpush1.bf16.msra.mxu1 %v3479_v62 }
 0x54f   :  { %2745 = vmatprep.subr.bf16.mxu0 %v3484_v22  ;;  %2777 = vmatprep.subr.bf16.mxu1 %v3486_v38 }
 0x552   :  { %2747 = vmatpush1.bf16.msra.mxu0 %v3488_v18  ;;  %2779 = vmatpush1.bf16.msra.mxu1 %v3491_v21 }
 0x553   :  { %2749 = vmatprep.subr.bf16.mxu0 %v3496_v50  ;;  %2781 = vmatprep.subr.bf16.mxu1 %v3498_v2 }
 0x556   :  { %2751 = vmatpush1.bf16.msra.mxu0 %v3500_v5  ;;  %2783 = vmatpush1.bf16.msra.mxu1 %v3503_v15 }
 0x557   :  { %2753 = vmatprep.subr.bf16.mxu0 %v3508_v33  ;;  %2785 = vmatprep.subr.bf16.mxu1 %v3510_v52 }
 0x55a   :  { %2755 = vmatpush1.bf16.msra.mxu0 %v3512_v56  ;;  %2787 = vmatpush1.bf16.msra.mxu1 %v3515_v32 }
 0x55b   :  { %2757 = vmatprep.subr.bf16.mxu0 %v3519_v44  ;;  %2789 = vmatprep.subr.bf16.mxu1 %v3521_v48 }
 0x55e   :  { %2759 = vmatpush1.bf16.msra.mxu0 %v3524_v59  ;;  %2791 = vmatpush1.bf16.msra.mxu1 %v3528_v25 }
 0x55f   :  { %2761 = vmatprep.subr.bf16.mxu0 %v3530_v34  ;;  %2793 = vmatprep.subr.bf16.mxu1 %v3532_v27 }
 0x562   :  { %2763 = vmatpush1.bf16.msra.mxu0 %v3535_v58  ;;  %2795 = vmatpush1.bf16.msra.mxu1 %v3539_v61 }
 0x563   :  { %2797 = vmatprep.subr.bf16.mxu0 %v2796_v3  ;;  %2829 = vmatprep.subr.bf16.mxu1 %v2828_v20 }
 0x618   :  { %v1698_v12 = vpop.f32.mrb[10].mxu0  ;;  %v1769_v29 = vpop.f32.mrb[10].mxu1 }
 0x619   :  { %v2870_v13 = vadd.f32 %v1698_v12, %v3340_v14  ;;  %v1700_v26 = vpop.f32.mrb[11].mxu0  ;;  %v1771_v17 = vpop.f32.mrb[11].mxu1  ;;  %v2886_v54 = vadd.f32 %v1769_v29, %v3346_v31  ;;  %v2052_v12 = vld [vmem:[#allocation5 + $0x10] sm:$0xff] }
 0x61a   :  { %v2871_v30 = vadd.f32 %v1700_v26, %v3342_v16  ;;  %v2887_v4 = vadd.f32 %v1771_v17, %v3349_v40  ;;  %v2056_v29 = vld [vmem:[#allocation5 + $0x30] sm:$0xff]  ;;  %v2059_v26 = vld [vmem:[#allocation5 + $0x48] sm:$0xff] }
 0x61b   :  { %v2328_v23 = vmul.f32 -1.442695, %v2870_v13  ;;  %v2330_v8 = vmul.f32 -1.442695, %v2886_v54  ;;  %v2830_v13 = vpack.c.bf16 %v2056_v29, %v2052_v12  ;;  %v2063_v17 = vld [vmem:[#allocation5 + $0x68] sm:$0xff]  ;;  %v2062_v54 = vld [vmem:[#allocation5 + $0x60] sm:$0xff] }
 0x61c   :  { %v2329_v47 = vmul.f32 -1.442695, %v2871_v30  ;;  %v2061_v30 = vld [vmem:[#allocation5 + $0x58] sm:$0xff] }
 0x61d   :  { %3008 = vpow2.f32 %v2328_v23  ;;  %v2065_v23 = vld [vmem:[#allocation5 + $0x78] sm:$0xff] }
 0x61e   :  { %3010 = vpow2.f32 %v2329_v47  ;;  %v2058_v47 = vld [vmem:[#allocation5 + $0x40] sm:$0xff] }
 0x61f   :  { %3012 = vtanh.f32 %v2887_v4  ;;  %v2832_v4 = vpack.c.bf16 %v2065_v23, %v2061_v30 }
 0x620   :  { %3014 = vpow2.f32 %v2330_v8  ;;  %v2802_v8 = vpack.c.bf16 %v2062_v54, %v2058_v47 }
 0x627   :  { %v3009_v11 = vpop.eup %3008 }
 0x628   :  { %v1787_v19 = vadd.f32 1.0, %v3009_v11  ;;  %v3011_v24 = vpop.eup %3010  ;;  %v2060_v11 = vld [vmem:[#allocation5 + $0x50] sm:$0xff] }
 0x629   :  { %v1788_v28 = vadd.f32 1.0, %v3011_v24  ;;  %v3013_v39 = vpop.eup %3012 }
 0x62a   :  { %3016 = vrcp.f32 %v1787_v19  ;;  %v3015_v43 = vpop.eup %3014  ;;  %v2064_v19 = vld [vmem:[#allocation5 + $0x70] sm:$0xff] }
 0x62b   :  { %3018 = vrcp.f32 %v1788_v28  ;;  %v1789_v63 = vadd.f32 1.0, %v3015_v43  ;;  %v2834_v24 = vpack.c.bf16 %v2064_v19, %v2060_v11 }
 0x62d   :  { %3020 = vrcp.f32 %v1789_v63 }
 0x634   :  { %v3017_v46 = vpop.eup %3016 }
 0x635   :  { %v1798_v60 = vmul.f32 %v3017_v46, %v3013_v39  ;;  %v3019_v1 = vpop.eup %3018 }
 0x636   :  { %v1797_v6 = vmul.f32 %v3019_v1, %v3596_v9  ;;  %v2050_v9 = vld [vmem:[#allocation5] sm:$0xff] }
 0x637   :  { %v3021_v36 = vpop.eup %3020  ;;  %v2798_v42 = vpack.c.bf16 %v2054_v35, %v2050_v9 }
 0x638   :  { %v3639_v10 = vadd.f32 %v1798_v60, %v1797_v6 }
 0x63a   :  { %3022 = vtanh.f32 %v3639_v10 }
 0x644   :  { %v3023_v37 = vpop.eup %3022 }
 0x645   :  { %v1801_v41 = vmul.f32 %v3023_v37, %v3021_v36 }
 0x647   :  { %2331 = vst [vmem:[%s3690_s4 + $0x28] sm:$0xff] %v1801_v41  ;;  %1938 = vmatmul.mubr.f32.vlgmr.msra.gmra.mrb[12].mxu0 %v1801_v41  ;;  %2009 = vmatmul.mubr.f32.vlgmr.msra.gmra.mrb[12].mxu1 %v1801_v41 }
 0x648   :  { %2178 = vmatprep.mubr.f32.mxu0 %v3083_v0  ;;  %2249 = vmatprep.mubr.f32.mxu1 %v3083_v0  ;;  %v2800_v0 = vpack.c.bf16 %v2063_v17, %v2059_v26 }
 0x649   :  { %2799 = vmatpush1.bf16.msra.mxu0 %v2798_v42  ;;  %2831 = vmatpush1.bf16.msra.mxu1 %v2830_v13 }
 0x64a   :  { %2801 = vmatprep.subr.bf16.mxu0 %v2800_v0  ;;  %2833 = vmatprep.subr.bf16.mxu1 %v2832_v4 }
 0x64d   :  { %2803 = vmatpush1.bf16.msra.mxu0 %v2802_v8  ;;  %2835 = vmatpush1.bf16.msra.mxu1 %v2834_v24 }
 0x64e   :  { %2805 = vmatprep.subr.bf16.mxu0 %v3472_v45  ;;  %2837 = vmatprep.subr.bf16.mxu1 %v3474_v53 }
 0x651   :  { %2807 = vmatpush1.bf16.msra.mxu0 %v3476_v55  ;;  %2839 = vmatpush1.bf16.msra.mxu1 %v3479_v62 }
 0x652   :  { %2809 = vmatprep.subr.bf16.mxu0 %v3484_v22  ;;  %2841 = vmatprep.subr.bf16.mxu1 %v3486_v38 }
 0x655   :  { %2811 = vmatpush1.bf16.msra.mxu0 %v3488_v18  ;;  %2843 = vmatpush1.bf16.msra.mxu1 %v3491_v21 }
 0x656   :  { %2813 = vmatprep.subr.bf16.mxu0 %v3496_v50  ;;  %2845 = vmatprep.subr.bf16.mxu1 %v3498_v2 }
 0x659   :  { %2815 = vmatpush1.bf16.msra.mxu0 %v3500_v5  ;;  %2847 = vmatpush1.bf16.msra.mxu1 %v3503_v15 }
 0x65a   :  { %2817 = vmatprep.subr.bf16.mxu0 %v3508_v33  ;;  %2849 = vmatprep.subr.bf16.mxu1 %v3510_v52 }
 0x65d   :  { %2819 = vmatpush1.bf16.msra.mxu0 %v3512_v56  ;;  %2851 = vmatpush1.bf16.msra.mxu1 %v3515_v32 }
 0x65e   :  { %2821 = vmatprep.subr.bf16.mxu0 %v3519_v44  ;;  %2853 = vmatprep.subr.bf16.mxu1 %v3521_v48 }
 0x661   :  { %2823 = vmatpush1.bf16.msra.mxu0 %v3524_v59  ;;  %2855 = vmatpush1.bf16.msra.mxu1 %v3528_v25 }
 0x662   :  { %2825 = vmatprep.subr.bf16.mxu0 %v3530_v34  ;;  %2857 = vmatprep.subr.bf16.mxu1 %v3532_v27 }
 0x665   :  { %2827 = vmatpush1.bf16.msra.mxu0 %v3535_v58  ;;  %2859 = vmatpush1.bf16.msra.mxu1 %v3539_v61 }
 0x71a   :  { %v1939_v45 = vpop.f32.mrb[12].mxu0  ;;  %v2010_v53 = vpop.f32.mrb[12].mxu1 }
 0x71b   :  { %v2872_v55 = vadd.f32 %v1939_v45, %v3340_v14  ;;  %v1941_v62 = vpop.f32.mrb[13].mxu0  ;;  %v2012_v22 = vpop.f32.mrb[13].mxu1  ;;  %v2888_v50 = vadd.f32 %v2010_v53, %v3346_v31 }
 0x71c   :  { %v2873_v38 = vadd.f32 %v1941_v62, %v3342_v16  ;;  %v2889_v2 = vadd.f32 %v2012_v22, %v3349_v40 }
 0x71d   :  { %v2332_v18 = vmul.f32 -1.442695, %v2872_v55  ;;  %v2334_v5 = vmul.f32 -1.442695, %v2888_v50 }
 0x71e   :  { %v2333_v21 = vmul.f32 -1.442695, %v2873_v38 }
 0x71f   :  { %3024 = vpow2.f32 %v2332_v18 }
 0x720   :  { %3026 = vpow2.f32 %v2333_v21 }
 0x721   :  { %3028 = vtanh.f32 %v2889_v2 }
 0x722   :  { %3030 = vpow2.f32 %v2334_v5 }
 0x729   :  { %v3025_v15 = vpop.eup %3024 }
 0x72a   :  { %v2028_v33 = vadd.f32 1.0, %v3025_v15  ;;  %v3027_v52 = vpop.eup %3026 }
 0x72b   :  { %v2029_v56 = vadd.f32 1.0, %v3027_v52  ;;  %v3029_v32 = vpop.eup %3028 }
 0x72c   :  { %3032 = vrcp.f32 %v2028_v33  ;;  %v3031_v44 = vpop.eup %3030 }
 0x72d   :  { %3034 = vrcp.f32 %v2029_v56  ;;  %v2030_v34 = vadd.f32 1.0, %v3031_v44 }
 0x72f   :  { %3036 = vrcp.f32 %v2030_v34 }
 0x736   :  { %v3033_v48 = vpop.eup %3032 }
 0x737   :  { %v2039_v59 = vmul.f32 %v3033_v48, %v3029_v32  ;;  %v3035_v25 = vpop.eup %3034 }
 0x738   :  { %v2038_v27 = vmul.f32 %v3035_v25, %v3639_v10 }
 0x739   :  { %v3037_v61 = vpop.eup %3036 }
 0x73a   :  { %v2040_v58 = vadd.f32 %v2039_v59, %v2038_v27 }
 0x73c   :  { %3038 = vtanh.f32 %v2040_v58 }
 0x746   :  { %v3039_v28 = vpop.eup %3038 }
 0x747   :  { %v2042_v39 = vmul.f32 %v3039_v28, %v3037_v61 }
 0x749   :  { %2335 = vst [vmem:[%s3690_s4 + $0x30] sm:$0xff] %v2042_v39  ;;  %2179 = vmatmul.mubr.f32.vlgmr.msra.gmra.mrb[14].mxu0 %v2042_v39  ;;  %2250 = vmatmul.mubr.f32.vlgmr.msra.gmra.mrb[14].mxu1 %v2042_v39 }
 0x81c   :  { %v2180_v43 = vpop.f32.mrb[14].mxu0  ;;  %v2251_v46 = vpop.f32.mrb[14].mxu1 }
 0x81d   :  { %v2874_v60 = vadd.f32 %v2180_v43, %v3340_v14  ;;  %v2182_v1 = vpop.f32.mrb[15].mxu0  ;;  %v2253_v63 = vpop.f32.mrb[15].mxu1  ;;  %v2890_v37 = vadd.f32 %v2251_v46, %v3346_v31 }
 0x81e   :  { %v2875_v6 = vadd.f32 %v2182_v1, %v3342_v16  ;;  %v2891_v41 = vadd.f32 %v2253_v63, %v3349_v40 }
 0x81f   :  { %v2336_v10 = vmul.f32 -1.442695, %v2874_v60  ;;  %v2338_v49 = vmul.f32 -1.442695, %v2890_v37 }
 0x820   :  { %v2337_v36 = vmul.f32 -1.442695, %v2875_v6 }
 0x821   :  { %3040 = vpow2.f32 %v2336_v10 }
 0x822   :  { %3042 = vpow2.f32 %v2337_v36 }
 0x823   :  { %3044 = vtanh.f32 %v2891_v41 }
 0x824   :  { %3046 = vpow2.f32 %v2338_v49 }
 0x82b   :  { %v3041_v51 = vpop.eup %3040 }
 0x82c   :  { %v2269_v57 = vadd.f32 1.0, %v3041_v51  ;;  %v3043_v3 = vpop.eup %3042 }
 0x82d   :  { %v2270_v14 = vadd.f32 1.0, %v3043_v3  ;;  %v3045_v7 = vpop.eup %3044 }
 0x82e   :  { %3048 = vrcp.f32 %v2269_v57  ;;  %v3047_v9 = vpop.eup %3046 }
 0x82f   :  { %3050 = vrcp.f32 %v2270_v14  ;;  %v2271_v42 = vadd.f32 1.0, %v3047_v9 }
 0x831   :  { %3052 = vrcp.f32 %v2271_v42 }
 0x838   :  { %v3049_v16 = vpop.eup %3048 }
 0x839   :  { %v2280_v35 = vmul.f32 %v3049_v16, %v3045_v7  ;;  %v3051_v20 = vpop.eup %3050 }
 0x83a   :  { %v2279_v12 = vmul.f32 %v3051_v20, %v2040_v58 }
 0x83b   :  { %v3053_v31 = vpop.eup %3052 }
 0x83c   :  { %v2281_v29 = vadd.f32 %v2280_v35, %v2279_v12 }
 0x83e   :  { %3054 = vtanh.f32 %v2281_v29 }
 0x848   :  { %v3055_v40 = vpop.eup %3054 }
 0x849   :  { %v2283_v13 = vmul.f32 %v3055_v40, %v3053_v31 }
 0x84b   :  { %2339 = vst [vmem:[%s3690_s4 + $0x38] sm:$0xff] %v2283_v13 }
 0x84c   :  { %2292 = vsyncpa [#allocation6], 1 }

</bundles_post_ra>
